<compile_context>
chip_gen: v7x
topology: tpu7x:2x2x1
jax: 0.10.0
libtpu: 0.0.40
codegen_flags: <defaults>
</compile_context>

<pallas_src>
import functools

import numpy as np
import jax
import jax.numpy as jnp
from jax import lax
from jax.experimental import pallas as pl
from jax.experimental.pallas import tpu as pltpu

BN_EPS = 1e-5
LANE = 128


def _round_up(x, m):
    return (x + m - 1) // m * m


# ---------------------------------------------------------------------------
# Pallas kernels
# ---------------------------------------------------------------------------
def _matmul_stats_kernel(p_ref, w_ref, y_ref, s_ref):
    """One M-tile: conv matmul (bf16 -> f32 acc) + per-channel partial stats."""
    acc = jnp.dot(p_ref[...], w_ref[...], preferred_element_type=jnp.float32)
    y_ref[...] = acc
    # Partial BatchNorm statistics for this tile (zero-padded rows add 0).
    s_ref[0, 0:1, :] = jnp.sum(acc, axis=0, keepdims=True)
    s_ref[0, 1:2, :] = jnp.sum(acc * acc, axis=0, keepdims=True)


def _bn_relu_kernel(y_ref, scale_ref, shift_ref, o_ref):
    """Normalize + affine + ReLU on one M-tile (embarrassingly parallel)."""
    y = y_ref[...] * scale_ref[...] + shift_ref[...]
    o_ref[...] = jnp.maximum(y, 0.0).astype(o_ref.dtype)


# ---------------------------------------------------------------------------
# JAX-side plumbing
# ---------------------------------------------------------------------------
def _im2col_3d(x_ndhwc):
    """(N, D, H, W, C) -> (N*D*H*W, 27*C) patches for a 3x3x3 conv, pad=1."""
    n, d, h, w, c = x_ndhwc.shape
    xp = jnp.pad(x_ndhwc, ((0, 0), (1, 1), (1, 1), (1, 1), (0, 0)))
    slabs = [
        xp[:, kd:kd + d, kh:kh + h, kw:kw + w, :]
        for kd in range(3) for kh in range(3) for kw in range(3)
    ]
    patches = jnp.stack(slabs, axis=4)            # (N, D, H, W, 27, C)
    return patches.reshape(n * d * h * w, 27 * c)


def conv_bn_relu_block(x_ndhwc, w_dhwio, gamma, beta, *, out_dtype, tile_m=512):
    n, d, h, w, cin = x_ndhwc.shape
    cout = w_dhwio.shape[-1]
    m = n * d * h * w
    k = 27 * cin
    kp = _round_up(k, LANE)
    coutp = _round_up(cout, LANE)
    # M tile: ~512 rows (fits comfortably in v7x's 64 MiB VMEM with double
    # buffering; sweep larger on v6e if desired).
    tm = max(8, min(_round_up(m, 8), tile_m))
    mp = _round_up(m, tm)
    num_tiles = mp // tm

    # im2col in bf16, zero-padded to (mp, kp).  Zero rows / zero K columns
    # contribute nothing to the matmul or the BN statistics.
    patches = _im2col_3d(x_ndhwc.astype(jnp.bfloat16))
    patches = jnp.pad(patches, ((0, mp - m), (0, kp - k)))

    w_flat = w_dhwio.reshape(k, cout).astype(jnp.bfloat16)
    w_flat = jnp.pad(w_flat, ((0, kp - k), (0, coutp - cout)))
    gamma_p = jnp.pad(gamma.astype(jnp.float32), (0, coutp - cout))  # pad g=0
    beta_p = jnp.pad(beta.astype(jnp.float32), (0, coutp - cout))    # pad b=0

    cparams = pltpu.CompilerParams(
        dimension_semantics=("parallel",),
        vmem_limit_bytes=32 * 1024 * 1024,
    )

    # ---- Pass A: tiled matmul + per-tile BN statistics --------------------
    bytes_a = mp * kp * 2 + kp * coutp * 2 + mp * coutp * 4 + num_tiles * 2 * coutp * 4
    y, stats = pl.pallas_call(
        _matmul_stats_kernel,
        out_shape=(
            jax.ShapeDtypeStruct((mp, coutp), jnp.float32),
            jax.ShapeDtypeStruct((num_tiles, 2, coutp), jnp.float32),
        ),
        grid=(num_tiles,),
        in_specs=[
            pl.BlockSpec((tm, kp), lambda i: (i, 0)),
            pl.BlockSpec((kp, coutp), lambda i: (0, 0)),
        ],
        out_specs=(
            pl.BlockSpec((tm, coutp), lambda i: (i, 0)),
            pl.BlockSpec((1, 2, coutp), lambda i: (i, 0, 0)),
        ),
        compiler_params=cparams,
        cost_estimate=pl.CostEstimate(
            flops=2 * mp * kp * coutp, transcendentals=0, bytes_accessed=bytes_a),
    )(patches, w_flat)

    # ---- BN statistics -> per-channel scale / shift (tiny, plain JAX) -----
    tot = jnp.sum(stats, axis=0)                        # (2, coutp)
    mean = tot[0] / m                                   # divide by true M
    var = jnp.maximum(tot[1] / m - mean * mean, 0.0)    # biased variance
    scale = gamma_p * lax.rsqrt(var + BN_EPS)
    shift = beta_p - mean * scale

    # ---- Pass B: normalize + ReLU (lane-dense, fully parallel) ------------
    out_itemsize = np.dtype(out_dtype).itemsize
    bytes_b = mp * coutp * 4 + 2 * coutp * 4 + mp * coutp * out_itemsize
    out = pl.pallas_call(
        _bn_relu_kernel,
        out_shape=jax.ShapeDtypeStruct((mp, coutp), out_dtype),
        grid=(num_tiles,),
        in_specs=[
            pl.BlockSpec((tm, coutp), lambda i: (i, 0)),
            pl.BlockSpec((1, coutp), lambda i: (0, 0)),
            pl.BlockSpec((1, coutp), lambda i: (0, 0)),
        ],
        out_specs=pl.BlockSpec((tm, coutp), lambda i: (i, 0)),
        compiler_params=cparams,
        cost_estimate=pl.CostEstimate(
            flops=2 * mp * coutp, transcendentals=0, bytes_accessed=bytes_b),
    )(y, scale.reshape(1, coutp), shift.reshape(1, coutp))

    return out[:m, :cout].reshape(n, d, h, w, cout)


def init_pub_params(key, in_channels, out_channels):
    inter = in_channels // 2 if in_channels > out_channels else out_channels // 2
    k1, k2, k3, k4 = jax.random.split(key, 4)
    return {
        # weights stored (kd, kh, kw, Cin, Cout) == DHWIO
        "w1": 0.1 * jax.random.normal(k1, (3, 3, 3, in_channels, inter), jnp.float32),
        "b1": 0.05 * jax.random.normal(k2, (inter,), jnp.float32),
        "g1": jnp.ones((inter,), jnp.float32),
        "beta1": jnp.zeros((inter,), jnp.float32),
        "w2": 0.1 * jax.random.normal(k3, (3, 3, 3, inter, out_channels), jnp.float32),
        "b2": 0.05 * jax.random.normal(k4, (out_channels,), jnp.float32),
        "g2": jnp.ones((out_channels,), jnp.float32),
        "beta2": jnp.zeros((out_channels,), jnp.float32),
    }


def pub_forward(x_ncdhw, params, *, tile_m=512):
    """Pallas implementation. Input/output in PyTorch NCDHW layout."""
    x = jnp.transpose(x_ncdhw, (0, 2, 3, 4, 1))           # -> NDHWC
    # Conv bias is omitted: it is exactly cancelled by training-mode BN.
    h1 = conv_bn_relu_block(x, params["w1"], params["g1"], params["beta1"],
                            out_dtype=jnp.bfloat16, tile_m=tile_m)
    h2 = conv_bn_relu_block(h1, params["w2"], params["g2"], params["beta2"],
                            out_dtype=jnp.float32, tile_m=tile_m)
    return jnp.transpose(h2, (0, 4, 1, 2, 3))             # back to NCDHW


def pub_reference(x_ncdhw, params, *, match_bf16=True):
    """Pure-JAX reference with identical semantics (optionally bf16-matched)."""
    x = jnp.transpose(x_ncdhw, (0, 2, 3, 4, 1))

    def block(xin, w, b, g, beta, cast_out):
        lhs = xin.astype(jnp.bfloat16) if match_bf16 else xin
        rhs = w.astype(jnp.bfloat16) if match_bf16 else w
        y = lax.conv_general_dilated(
            lhs, rhs, window_strides=(1, 1, 1), padding="SAME",
            dimension_numbers=("NDHWC", "DHWIO", "NDHWC"),
            preferred_element_type=jnp.float32)
        y = y + b                       # cancelled by BN mean subtraction
        mean = jnp.mean(y, axis=(0, 1, 2, 3), keepdims=True)
        var = jnp.mean((y - mean) ** 2, axis=(0, 1, 2, 3), keepdims=True)
        y = (y - mean) * lax.rsqrt(var + BN_EPS) * g + beta
        y = jnp.maximum(y, 0.0)
        if cast_out and match_bf16:
            y = y.astype(jnp.bfloat16).astype(jnp.float32)
        return y

    y = block(x, params["w1"], params["b1"], params["g1"], params["beta1"], True)
    y = block(y, params["w2"], params["b2"], params["g2"], params["beta2"], False)
    return jnp.transpose(y, (0, 4, 1, 2, 3))


if __name__ == "__main__":
    key = jax.random.PRNGKey(0)
    k_x, k_p = jax.random.split(key)

    in_channels, out_channels = 4, 8
    N, D, H, W = 2, 8, 8, 8
    x = jax.random.normal(k_x, (N, in_channels, D, H, W), jnp.float32)  # NCDHW

    params = init_pub_params(k_p, in_channels, out_channels)

    fwd = jax.jit(functools.partial(pub_forward, tile_m=512))
    out = jax.block_until_ready(fwd(x, params))
    ref = jax.block_until_ready(pub_reference(x, params, match_bf16=True))

    assert out.shape == (N, out_channels, D, H, W), out.shape
    max_err = float(jnp.max(jnp.abs(out - ref)))
    if max_err > 2e-2:
        raise RuntimeError(f"Pallas result mismatch vs reference: max_err={max_err}")

    print("KERNEL_OK")
</pallas_src>

<mosaic_0001>
module attributes {stable_mosaic.version = 11 : i64} {
  func.func @_matmul_stats_kernel(%arg0: i32, %arg1: memref<512x128xbf16, #tpu.memory_space<vmem>>, %arg2: memref<128x128xbf16, #tpu.memory_space<vmem>>, %arg3: memref<512x128xf32, #tpu.memory_space<vmem>>, %arg4: memref<1x2x128xf32, #tpu.memory_space<vmem>>) attributes {dimension_semantics = [#tpu.dimension_semantics<parallel>], iteration_bounds = array<i64: 2>, scalar_prefetch = 0 : i64, scratch_operands = 0 : i64, tpu.core_type = #tpu.core_type<tc>, window_params = [{transform_indices = @transform_0, window_bounds = array<i64: 512, 128>}, {pipeline_mode = #tpu.pipeline_mode<synchronous>, transform_indices = @transform_1, window_bounds = array<i64: 128, 128>}, {transform_indices = @transform_2, window_bounds = array<i64: 512, 128>}, {transform_indices = @transform_3, window_bounds = array<i64: 1, 2, 128>}]} {
    %c0 = arith.constant 0 : index
    %c0_0 = arith.constant 0 : index
    %0 = vector.load %arg1[%c0, %c0_0] : memref<512x128xbf16, #tpu.memory_space<vmem>>, vector<512x128xbf16>
    %c0_1 = arith.constant 0 : index
    %c0_2 = arith.constant 0 : index
    %1 = vector.load %arg2[%c0_1, %c0_2] : memref<128x128xbf16, #tpu.memory_space<vmem>>, vector<128x128xbf16>
    %cst = arith.constant dense<0.000000e+00> : vector<512x128xf32>
    %2 = tpu.matmul %0, %1, %cst {dimension_numbers = #tpu.dot_dimension_numbers<[1], [0], [0], [1], [0, 0, 1, 1], [], []>} : vector<512x128xbf16>, vector<128x128xbf16>, vector<512x128xf32> -> vector<512x128xf32>
    %c0_3 = arith.constant 0 : index
    %c0_4 = arith.constant 0 : index
    %3 = vector.load %arg3[%c0_3, %c0_4] : memref<512x128xf32, #tpu.memory_space<vmem>>, vector<512x128xf32>
    tpu.vector_store %arg3[%c0_3, %c0_4], %2 {strides = array<i32>} : memref<512x128xf32, #tpu.memory_space<vmem>>, vector<512x128xf32>,
    %cst_5 = arith.constant dense<0.000000e+00> : vector<128xf32>
    %4 = vector.multi_reduction <add>, %2, %cst_5 [0] : vector<512x128xf32> to vector<128xf32>
    %5 = vector.shape_cast %4 : vector<128xf32> to vector<1x128xf32>
    %c0_6 = arith.constant 0 : index
    %c0_7 = arith.constant 0 : index
    %c0_8 = arith.constant 0 : index
    %6 = vector.load %arg4[%c0_6, %c0_7, %c0_8] : memref<1x2x128xf32, #tpu.memory_space<vmem>>, vector<1x1x128xf32>
    %7 = vector.shape_cast %6 : vector<1x1x128xf32> to vector<1x128xf32>
    %8 = vector.shape_cast %5 : vector<1x128xf32> to vector<1x1x128xf32>
    tpu.vector_store %arg4[%c0_6, %c0_7, %c0_8], %8 {strides = array<i32>} : memref<1x2x128xf32, #tpu.memory_space<vmem>>, vector<1x1x128xf32>,
    %9 = arith.mulf %2, %2 : vector<512x128xf32>
    %cst_9 = arith.constant dense<0.000000e+00> : vector<128xf32>
    %10 = vector.multi_reduction <add>, %9, %cst_9 [0] : vector<512x128xf32> to vector<128xf32>
    %11 = vector.shape_cast %10 : vector<128xf32> to vector<1x128xf32>
    %c0_10 = arith.constant 0 : index
    %c1 = arith.constant 1 : index
    %c0_11 = arith.constant 0 : index
    %12 = vector.load %arg4[%c0_10, %c1, %c0_11] : memref<1x2x128xf32, #tpu.memory_space<vmem>>, vector<1x1x128xf32>
    %13 = vector.shape_cast %12 : vector<1x1x128xf32> to vector<1x128xf32>
    %14 = vector.shape_cast %11 : vector<1x128xf32> to vector<1x1x128xf32>
    tpu.vector_store %arg4[%c0_10, %c1, %c0_11], %14 {strides = array<i32>} : memref<1x2x128xf32, #tpu.memory_space<vmem>>, vector<1x1x128xf32>,
    return
  }
  func.func @transform_0(%arg0: i32) -> (i32, i32) {
    %c0_i32 = arith.constant 0 : i32
    %c0_i32_0 = arith.constant 0 : i32
    return %arg0, %c0_i32 : i32, i32
  }
  func.func @transform_1(%arg0: i32) -> (i32, i32) {
    %c0_i32 = arith.constant 0 : i32
    %c0_i32_0 = arith.constant 0 : i32
    %c0_i32_1 = arith.constant 0 : i32
    return %c0_i32, %c0_i32_0 : i32, i32
  }
  func.func @transform_2(%arg0: i32) -> (i32, i32) {
    %c0_i32 = arith.constant 0 : i32
    %c0_i32_0 = arith.constant 0 : i32
    return %arg0, %c0_i32 : i32, i32
  }
  func.func @transform_3(%arg0: i32) -> (i32, i32, i32) {
    %c0_i32 = arith.constant 0 : i32
    %c0_i32_0 = arith.constant 0 : i32
    %c0_i32_1 = arith.constant 0 : i32
    return %arg0, %c0_i32, %c0_i32_0 : i32, i32, i32
  }
}

module attributes {stable_mosaic.version = 11 : i64} {
  func.func @_bn_relu_kernel(%arg0: i32, %arg1: memref<512x128xf32, #tpu.memory_space<vmem>>, %arg2: memref<1x128xf32, #tpu.memory_space<vmem>>, %arg3: memref<1x128xf32, #tpu.memory_space<vmem>>, %arg4: memref<512x128xbf16, #tpu.memory_space<vmem>>) attributes {dimension_semantics = [#tpu.dimension_semantics<parallel>], iteration_bounds = array<i64: 2>, scalar_prefetch = 0 : i64, scratch_operands = 0 : i64, tpu.core_type = #tpu.core_type<tc>, window_params = [{transform_indices = @transform_0, window_bounds = array<i64: 512, 128>}, {pipeline_mode = #tpu.pipeline_mode<synchronous>, transform_indices = @transform_1, window_bounds = array<i64: 1, 128>}, {pipeline_mode = #tpu.pipeline_mode<synchronous>, transform_indices = @transform_2, window_bounds = array<i64: 1, 128>}, {transform_indices = @transform_3, window_bounds = array<i64: 512, 128>}]} {
    %c0 = arith.constant 0 : index
    %c0_0 = arith.constant 0 : index
    %0 = vector.load %arg1[%c0, %c0_0] : memref<512x128xf32, #tpu.memory_space<vmem>>, vector<512x128xf32>
    %c0_1 = arith.constant 0 : index
    %c0_2 = arith.constant 0 : index
    %1 = vector.load %arg2[%c0_1, %c0_2] : memref<1x128xf32, #tpu.memory_space<vmem>>, vector<1x128xf32>
    %2 = vector.broadcast %1 : vector<1x128xf32> to vector<512x128xf32>
    %3 = arith.mulf %0, %2 : vector<512x128xf32>
    %c0_3 = arith.constant 0 : index
    %c0_4 = arith.constant 0 : index
    %4 = vector.load %arg3[%c0_3, %c0_4] : memref<1x128xf32, #tpu.memory_space<vmem>>, vector<1x128xf32>
    %5 = vector.broadcast %4 : vector<1x128xf32> to vector<512x128xf32>
    %6 = arith.addf %3, %5 : vector<512x128xf32>
    %cst = arith.constant 0.000000e+00 : f32
    %7 = vector.broadcast %cst : f32 to vector<512x128xf32>
    %8 = arith.maximumf %6, %7 : vector<512x128xf32>
    %9 = arith.truncf %8 : vector<512x128xf32> to vector<512x128xbf16>
    %c0_5 = arith.constant 0 : index
    %c0_6 = arith.constant 0 : index
    %10 = vector.load %arg4[%c0_5, %c0_6] : memref<512x128xbf16, #tpu.memory_space<vmem>>, vector<512x128xbf16>
    tpu.vector_store %arg4[%c0_5, %c0_6], %9 {strides = array<i32>} : memref<512x128xbf16, #tpu.memory_space<vmem>>, vector<512x128xbf16>,
    return
  }
  func.func @transform_0(%arg0: i32) -> (i32, i32) {
    %c0_i32 = arith.constant 0 : i32
    %c0_i32_0 = arith.constant 0 : i32
    return %arg0, %c0_i32 : i32, i32
  }
  func.func @transform_1(%arg0: i32) -> (i32, i32) {
    %c0_i32 = arith.constant 0 : i32
    %c0_i32_0 = arith.constant 0 : i32
    %c0_i32_1 = arith.constant 0 : i32
    return %c0_i32, %c0_i32_0 : i32, i32
  }
  func.func @transform_2(%arg0: i32) -> (i32, i32) {
    %c0_i32 = arith.constant 0 : i32
    %c0_i32_0 = arith.constant 0 : i32
    %c0_i32_1 = arith.constant 0 : i32
    return %c0_i32, %c0_i32_0 : i32, i32
  }
  func.func @transform_3(%arg0: i32) -> (i32, i32) {
    %c0_i32 = arith.constant 0 : i32
    %c0_i32_0 = arith.constant 0 : i32
    return %arg0, %c0_i32 : i32, i32
  }
}

module attributes {stable_mosaic.version = 11 : i64} {
  func.func @_bn_relu_kernel(%arg0: i32, %arg1: memref<512x128xf32, #tpu.memory_space<vmem>>, %arg2: memref<1x128xf32, #tpu.memory_space<vmem>>, %arg3: memref<1x128xf32, #tpu.memory_space<vmem>>, %arg4: memref<512x128xf32, #tpu.memory_space<vmem>>) attributes {dimension_semantics = [#tpu.dimension_semantics<parallel>], iteration_bounds = array<i64: 2>, scalar_prefetch = 0 : i64, scratch_operands = 0 : i64, tpu.core_type = #tpu.core_type<tc>, window_params = [{transform_indices = @transform_0, window_bounds = array<i64: 512, 128>}, {pipeline_mode = #tpu.pipeline_mode<synchronous>, transform_indices = @transform_1, window_bounds = array<i64: 1, 128>}, {pipeline_mode = #tpu.pipeline_mode<synchronous>, transform_indices = @transform_2, window_bounds = array<i64: 1, 128>}, {transform_indices = @transform_3, window_bounds = array<i64: 512, 128>}]} {
    %c0 = arith.constant 0 : index
    %c0_0 = arith.constant 0 : index
    %0 = vector.load %arg1[%c0, %c0_0] : memref<512x128xf32, #tpu.memory_space<vmem>>, vector<512x128xf32>
    %c0_1 = arith.constant 0 : index
    %c0_2 = arith.constant 0 : index
    %1 = vector.load %arg2[%c0_1, %c0_2] : memref<1x128xf32, #tpu.memory_space<vmem>>, vector<1x128xf32>
    %2 = vector.broadcast %1 : vector<1x128xf32> to vector<512x128xf32>
    %3 = arith.mulf %0, %2 : vector<512x128xf32>
    %c0_3 = arith.constant 0 : index
    %c0_4 = arith.constant 0 : index
    %4 = vector.load %arg3[%c0_3, %c0_4] : memref<1x128xf32, #tpu.memory_space<vmem>>, vector<1x128xf32>
    %5 = vector.broadcast %4 : vector<1x128xf32> to vector<512x128xf32>
    %6 = arith.addf %3, %5 : vector<512x128xf32>
    %cst = arith.constant 0.000000e+00 : f32
    %7 = vector.broadcast %cst : f32 to vector<512x128xf32>
    %8 = arith.maximumf %6, %7 : vector<512x128xf32>
    %c0_5 = arith.constant 0 : index
    %c0_6 = arith.constant 0 : index
    %9 = vector.load %arg4[%c0_5, %c0_6] : memref<512x128xf32, #tpu.memory_space<vmem>>, vector<512x128xf32>
    tpu.vector_store %arg4[%c0_5, %c0_6], %8 {strides = array<i32>} : memref<512x128xf32, #tpu.memory_space<vmem>>, vector<512x128xf32>,
    return
  }
  func.func @transform_0(%arg0: i32) -> (i32, i32) {
    %c0_i32 = arith.constant 0 : i32
    %c0_i32_0 = arith.constant 0 : i32
    return %arg0, %c0_i32 : i32, i32
  }
  func.func @transform_1(%arg0: i32) -> (i32, i32) {
    %c0_i32 = arith.constant 0 : i32
    %c0_i32_0 = arith.constant 0 : i32
    %c0_i32_1 = arith.constant 0 : i32
    return %c0_i32, %c0_i32_0 : i32, i32
  }
  func.func @transform_2(%arg0: i32) -> (i32, i32) {
    %c0_i32 = arith.constant 0 : i32
    %c0_i32_0 = arith.constant 0 : i32
    %c0_i32_1 = arith.constant 0 : i32
    return %c0_i32, %c0_i32_0 : i32, i32
  }
  func.func @transform_3(%arg0: i32) -> (i32, i32) {
    %c0_i32 = arith.constant 0 : i32
    %c0_i32_0 = arith.constant 0 : i32
    return %arg0, %c0_i32 : i32, i32
  }
}

</mosaic_0001>

<bundles_post_ra>
// kernel: pub_forward.4
= control target key start
LH: loop header
LB: loop body
LE: loop exit
PB: predicated region body
PF: predicated region fallthrough
CT: control target
= control target key end

     0   :  { %s1414_s12 = smov 0   ;;  %s1759_s0 = inlined_call_operand.vmem [shape: bf16[1024,128], index: 0, kind: input, shape index: {}]   ;;  %s1760_s1 = inlined_call_operand.vmem [shape: bf16[128,128], index: 1, kind: input, shape index: {}]   ;;  %s1761_s2 = inlined_call_operand.vmem [shape: f32[1024,128], index: 2, kind: output, shape index: {0}]   ;;  %s1762_s3 = inlined_call_operand.vmem [shape: f32[2,2,128], index: 3, kind: output, shape index: {1}]  }
   0x1 LB: > { %s1420_s13 = sadd.s32 4294967295, %s1392_s12   ;;  %p1154_p0 = scmp.ge.s32.totalorder %s1392_s12, 1  ;;  %s1392_s12 = sphi %s1414_s12, %s14_s12  }
   0x2   : > { %p141_p1 = scmp.lt.s32.totalorder %s1392_s12, 3 }
   0x4   : > { %p142_p2 = pnand %p1154_p0, %p141_p1 }
   0x5   : > { %v1346_v0 = vld [vmem:[%s1760_s1] sm:$0xff] (!%p142_p2)   ;;  %s1155_s16 = sshll.u32 (!%p142_p2), %s1420_s13, 6  ;;  %v1347_v1 = vld [vmem:[%s1760_s1 + $0x8] sm:$0xff] (!%p142_p2)   ;;  %v1348_v2 = vld [vmem:[%s1760_s1 + $0x10] sm:$0xff] (!%p142_p2)   ;;  %p181_p4 = scmp.lt.s32.totalorder (!%p142_p2), %s1420_s13, 1 }
   0x6   : > { %145 = sbr.rel (%p142_p2) target bundleno = 394 (0x18a), region = 28  ;;  %p170_p3 = scmp.lt.s32.totalorder (!%p142_p2), %s1155_s16, 127  ;;  %1242 = vmatprep.subr.bf16.mxu0 (!%p142_p2), %v1346_v0  ;;  %1322 = vmatprep.subr.bf16.mxu1 (!%p142_p2), %v1346_v0  ;;  %v1349_v3 = vld [vmem:[%s1760_s1 + $0x18] sm:$0xff] (!%p142_p2)   ;;  %v1350_v5 = vld [vmem:[%s1760_s1 + $0x20] sm:$0xff] (!%p142_p2)   ;;  %v1351_v6 = vld [vmem:[%s1760_s1 + $0x28] sm:$0xff] (!%p142_p2)  }
   0x7   : > { %1243 = vmatpush3.bf16.msra.mxu0 (!%p142_p2), %v1346_v0  ;;  %1330 = vmatpush3.bf16.msra.mxu1 (!%p142_p2), %v1346_v0  ;;  %v1352_v7 = vld [vmem:[%s1760_s1 + $0x30] sm:$0xff] (!%p142_p2)   ;;  %v1353_v8 = vld [vmem:[%s1760_s1 + $0x38] sm:$0xff] (!%p142_p2)  }
   0x8   : > { %1244 = vmatprep.subr.bf16.mxu0 (!%p142_p2), %v1347_v1  ;;  %1323 = vmatprep.subr.bf16.mxu1 (!%p142_p2), %v1347_v1 }
   0xb   : > { %1245 = vmatpush3.bf16.msra.mxu0 (!%p142_p2), %v1347_v1  ;;  %1331 = vmatpush3.bf16.msra.mxu1 (!%p142_p2), %v1347_v1 }
   0xc   : > { %1246 = vmatprep.subr.bf16.mxu0 (!%p142_p2), %v1348_v2  ;;  %1324 = vmatprep.subr.bf16.mxu1 (!%p142_p2), %v1348_v2 }
   0xd   : > { %s1764_s16 = smov (!%p170_p3, %s1155_s16), 127  ;;  %s1766_s13 = smov (!%p181_p4, %s1420_s13), 1 }
   0xe   : > { %s1156_s21 = sshll.u32 %s1764_s16, 2  ;;  %s1158_s8 = sshll.u32 %s1764_s16, 3 }
   0xf   : > { %s1440_s24 = scalar_lea.vmem %s1759_s0, %s1156_s21  ;;  %1247 = vmatpush3.bf16.msra.mxu0 %v1348_v2  ;;  %1332 = vmatpush3.bf16.msra.mxu1 %v1348_v2  ;;  %s1493_s11 = scalar_lea.vmem %s1761_s2, %s1158_s8 }
  0x10   : > { %v1354_v4 = vld [vmem:[%s1440_s24] sm:$0xff]   ;;  %1248 = vmatprep.subr.bf16.mxu0 %v1349_v3  ;;  %1325 = vmatprep.subr.bf16.mxu1 %v1349_v3  ;;  %v1355_v10 = vld [vmem:[%s1440_s24 + $0x8] sm:$0xff]   ;;  %v1356_v11 = vld [vmem:[%s1440_s24 + $0x10] sm:$0xff]   ;;  %s1159_s14 = sshll.u32 %s1766_s13, 1 }
  0x11   : > { %1258 = vmatprep.mubr.bf16.mxu0 %v1354_v4  ;;  %v1370_v9 = vld [vmem:[%s1440_s24 + $0x80] sm:$0xff]   ;;  %v1371_v12 = vld [vmem:[%s1440_s24 + $0x88] sm:$0xff]   ;;  %v1372_v13 = vld [vmem:[%s1440_s24 + $0x90] sm:$0xff]   ;;  %s184_s17 = scalar_lea.vmem %s1762_s3, %s1159_s14 }
  0x12   : > { %1290 = vmatprep.mubr.bf16.mxu1 %v1370_v9  ;;  %v1357_v14 = vld [vmem:[%s1440_s24 + $0x18] sm:$0xff]   ;;  %v1358_v15 = vld [vmem:[%s1440_s24 + $0x20] sm:$0xff]   ;;  %v1359_v18 = vld [vmem:[%s1440_s24 + $0x28] sm:$0xff]  }
  0x13   : > { %1249 = vmatpush3.bf16.msra.mxu0 %v1349_v3  ;;  %1333 = vmatpush3.bf16.msra.mxu1 %v1349_v3  ;;  %v1373_v16 = vld [vmem:[%s1440_s24 + $0x98] sm:$0xff]   ;;  %v1374_v17 = vld [vmem:[%s1440_s24 + $0xa0] sm:$0xff]   ;;  %v1375_v19 = vld [vmem:[%s1440_s24 + $0xa8] sm:$0xff]  }
  0x14   : > { %1250 = vmatprep.subr.bf16.mxu0 %v1350_v5  ;;  %1326 = vmatprep.subr.bf16.mxu1 %v1350_v5  ;;  %v1360_v20 = vld [vmem:[%s1440_s24 + $0x30] sm:$0xff]   ;;  %v1361_v22 = vld [vmem:[%s1440_s24 + $0x38] sm:$0xff]   ;;  %v1362_v24 = vld [vmem:[%s1440_s24 + $0x40] sm:$0xff]  }
  0x15   : > { %v1376_v21 = vld [vmem:[%s1440_s24 + $0xb0] sm:$0xff]   ;;  %v1377_v23 = vld [vmem:[%s1440_s24 + $0xb8] sm:$0xff]   ;;  %v1378_v25 = vld [vmem:[%s1440_s24 + $0xc0] sm:$0xff]  }
  0x16   : > { %v1363_v26 = vld [vmem:[%s1440_s24 + $0x48] sm:$0xff]   ;;  %v1364_v28 = vld [vmem:[%s1440_s24 + $0x50] sm:$0xff]   ;;  %v1365_v30 = vld [vmem:[%s1440_s24 + $0x58] sm:$0xff]  }
  0x17   : > { %1251 = vmatpush3.bf16.msra.mxu0 %v1350_v5  ;;  %1334 = vmatpush3.bf16.msra.mxu1 %v1350_v5  ;;  %v1379_v27 = vld [vmem:[%s1440_s24 + $0xc8] sm:$0xff]   ;;  %v1380_v29 = vld [vmem:[%s1440_s24 + $0xd0] sm:$0xff]   ;;  %v1381_v31 = vld [vmem:[%s1440_s24 + $0xd8] sm:$0xff]  }
  0x18   : > { %1252 = vmatprep.subr.bf16.mxu0 %v1351_v6  ;;  %1327 = vmatprep.subr.bf16.mxu1 %v1351_v6  ;;  %v1366_v32 = vld [vmem:[%s1440_s24 + $0x60] sm:$0xff]   ;;  %v1367_v34 = vld [vmem:[%s1440_s24 + $0x68] sm:$0xff]   ;;  %v1368_v36 = vld [vmem:[%s1440_s24 + $0x70] sm:$0xff]  }
  0x19   : > { %v1382_v33 = vld [vmem:[%s1440_s24 + $0xe0] sm:$0xff]   ;;  %v1383_v35 = vld [vmem:[%s1440_s24 + $0xe8] sm:$0xff]   ;;  %v1384_v37 = vld [vmem:[%s1440_s24 + $0xf0] sm:$0xff]  }
  0x1a   : > { %v1369_v38 = vld [vmem:[%s1440_s24 + $0x78] sm:$0xff]  }
  0x1b   : > { %1253 = vmatpush3.bf16.msra.mxu0 %v1351_v6  ;;  %1335 = vmatpush3.bf16.msra.mxu1 %v1351_v6  ;;  %v1385_v39 = vld [vmem:[%s1440_s24 + $0xf8] sm:$0xff]  }
  0x1c   : > { %1254 = vmatprep.subr.bf16.mxu0 %v1352_v7  ;;  %1328 = vmatprep.subr.bf16.mxu1 %v1352_v7 }
  0x1f   : > { %1255 = vmatpush3.bf16.msra.mxu0 %v1352_v7  ;;  %1336 = vmatpush3.bf16.msra.mxu1 %v1352_v7 }
  0x20   : > { %1256 = vmatprep.subr.bf16.mxu0 %v1353_v8  ;;  %1329 = vmatprep.subr.bf16.mxu1 %v1353_v8 }
  0x23   : > { %1257 = vmatpush3.bf16.msra.mxu0 %v1353_v8  ;;  %1337 = vmatpush3.bf16.msra.mxu1 %v1353_v8 }
  0x26   : > { %1259 = vmatmul.mubr.bf16.vlgmr.msra.gmra.mrb[0].mxu0 %v1355_v10  ;;  %1291 = vmatmul.mubr.bf16.vlgmr.msra.gmra.mrb[0].mxu1 %v1371_v12 }
  0x27   : > { %1262 = vmatprep.mubr.bf16.mxu0 %v1356_v11  ;;  %1294 = vmatprep.mubr.bf16.mxu1 %v1372_v13 }
  0x2e   : > { %1263 = vmatmul.mubr.bf16.gmra.mrb[4].mxu0 %v1357_v14  ;;  %1295 = vmatmul.mubr.bf16.gmra.mrb[4].mxu1 %v1373_v16 }
  0x2f   : > { %1266 = vmatprep.mubr.bf16.mxu0 %v1358_v15  ;;  %1298 = vmatprep.mubr.bf16.mxu1 %v1374_v17 }
  0x36   : > { %1267 = vmatmul.mubr.bf16.gmra.mrb[8].mxu0 %v1359_v18  ;;  %1299 = vmatmul.mubr.bf16.gmra.mrb[8].mxu1 %v1375_v19 }
  0x37   : > { %1270 = vmatprep.mubr.bf16.mxu0 %v1360_v20  ;;  %1302 = vmatprep.mubr.bf16.mxu1 %v1376_v21 }
  0x3e   : > { %1271 = vmatmul.mubr.bf16.gmra.mrb[12].mxu0 %v1361_v22  ;;  %1303 = vmatmul.mubr.bf16.gmra.mrb[12].mxu1 %v1377_v23 }
  0x3f   : > { %1274 = vmatprep.mubr.bf16.mxu0 %v1362_v24  ;;  %1306 = vmatprep.mubr.bf16.mxu1 %v1378_v25 }
  0x46   : > { %1275 = vmatmul.mubr.bf16.gmra.mrb[16].mxu0 %v1363_v26  ;;  %1307 = vmatmul.mubr.bf16.gmra.mrb[16].mxu1 %v1379_v27 }
  0x47   : > { %1278 = vmatprep.mubr.bf16.mxu0 %v1364_v28  ;;  %1310 = vmatprep.mubr.bf16.mxu1 %v1380_v29 }
  0x4e   : > { %1279 = vmatmul.mubr.bf16.gmra.mrb[20].mxu0 %v1365_v30  ;;  %1311 = vmatmul.mubr.bf16.gmra.mrb[20].mxu1 %v1381_v31 }
  0x4f   : > { %1282 = vmatprep.mubr.bf16.mxu0 %v1366_v32  ;;  %1314 = vmatprep.mubr.bf16.mxu1 %v1382_v33 }
  0x56   : > { %1283 = vmatmul.mubr.bf16.gmra.mrb[24].mxu0 %v1367_v34  ;;  %1315 = vmatmul.mubr.bf16.gmra.mrb[24].mxu1 %v1383_v35 }
  0x57   : > { %1286 = vmatprep.mubr.bf16.mxu0 %v1368_v36  ;;  %1318 = vmatprep.mubr.bf16.mxu1 %v1384_v37 }
  0x5e   : > { %1287 = vmatmul.mubr.bf16.gmra.mrb[28].mxu0 %v1369_v38  ;;  %1319 = vmatmul.mubr.bf16.gmra.mrb[28].mxu1 %v1385_v39 }
  0xf9   : > { %v1260_v40 = vpop.f32.mrb[0].mxu0  ;;  %v1495_v41 = vpop.f32.mrb[0].mxu1 }
  0xfa   : > { %797 = vst [vmem:[%s1493_s11 + $0x10] sm:$0xff] %v1260_v40  ;;  %v540_v42 = vpop.f32.mrb[1].mxu0  ;;  %829 = vst [vmem:[%s1493_s11 + $0x110] sm:$0xff] %v1495_v41  ;;  %v1500_v43 = vpop.f32.mrb[1].mxu1  ;;  %v931_v51 = vmul.f32 %v1260_v40, %v1260_v40 }
  0xfb   : > { %795 = vst [vmem:[%s1493_s11] sm:$0xff] %v540_v42  ;;  %v1261_v44 = vpop.f32.mrb[2].mxu0  ;;  %827 = vst [vmem:[%s1493_s11 + $0x100] sm:$0xff] %v1500_v43  ;;  %v1505_v45 = vpop.f32.mrb[2].mxu1  ;;  %v929_v48 = vmul.f32 %v540_v42, %v540_v42 }
  0xfc   : > { %798 = vst [vmem:[%s1493_s11 + $0x18] sm:$0xff] %v1261_v44  ;;  %v543_v46 = vpop.f32.mrb[3].mxu0  ;;  %830 = vst [vmem:[%s1493_s11 + $0x118] sm:$0xff] %v1505_v45  ;;  %v1510_v47 = vpop.f32.mrb[3].mxu1  ;;  %v932_v54 = vmul.f32 %v1261_v44, %v1261_v44 }
  0xfd   : > { %796 = vst [vmem:[%s1493_s11 + $0x8] sm:$0xff] %v543_v46  ;;  %v859_v49 = vadd.f32 %v543_v46, %v540_v42  ;;  %v930_v50 = vmul.f32 %v543_v46, %v543_v46  ;;  %828 = vst [vmem:[%s1493_s11 + $0x108] sm:$0xff] %v1510_v47 }
  0xff   : > { %v860_v52 = vadd.f32 %v1260_v40, %v859_v49  ;;  %v993_v53 = vadd.f32 %v930_v50, %v929_v48 }
 0x101   : > { %v994_v55 = vadd.f32 %v993_v53, %v931_v51  ;;  %v1264_v56 = vpop.f32.mrb[4].mxu0  ;;  %v861_v57 = vadd.f32 %v1261_v44, %v860_v52  ;;  %v1515_v58 = vpop.f32.mrb[4].mxu1 }
 0x102   : > { %801 = vst [vmem:[%s1493_s11 + $0x30] sm:$0xff] %v1264_v56  ;;  %v556_v59 = vpop.f32.mrb[5].mxu0  ;;  %833 = vst [vmem:[%s1493_s11 + $0x130] sm:$0xff] %v1515_v58  ;;  %v1520_v60 = vpop.f32.mrb[5].mxu1  ;;  %v935_v7 = vmul.f32 %v1264_v56, %v1264_v56 }
 0x103   : > { %799 = vst [vmem:[%s1493_s11 + $0x20] sm:$0xff] %v556_v59  ;;  %v862_v61 = vadd.f32 %v861_v57, %v556_v59  ;;  %v933_v62 = vmul.f32 %v556_v59, %v556_v59  ;;  %v995_v63 = vadd.f32 %v994_v55, %v932_v54  ;;  %v1265_v0 = vpop.f32.mrb[6].mxu0  ;;  %831 = vst [vmem:[%s1493_s11 + $0x120] sm:$0xff] %v1520_v60  ;;  %v1525_v1 = vpop.f32.mrb[6].mxu1 }
 0x104   : > { %802 = vst [vmem:[%s1493_s11 + $0x38] sm:$0xff] %v1265_v0  ;;  %v559_v2 = vpop.f32.mrb[7].mxu0  ;;  %834 = vst [vmem:[%s1493_s11 + $0x138] sm:$0xff] %v1525_v1  ;;  %v1530_v3 = vpop.f32.mrb[7].mxu1  ;;  %v936_v10 = vmul.f32 %v1265_v0, %v1265_v0 }
 0x105   : > { %v996_v4 = vadd.f32 %v995_v63, %v933_v62  ;;  %800 = vst [vmem:[%s1493_s11 + $0x28] sm:$0xff] %v559_v2  ;;  %v863_v5 = vadd.f32 %v862_v61, %v559_v2  ;;  %v934_v6 = vmul.f32 %v559_v2, %v559_v2  ;;  %832 = vst [vmem:[%s1493_s11 + $0x128] sm:$0xff] %v1530_v3 }
 0x107   : > { %v864_v8 = vadd.f32 %v1264_v56, %v863_v5  ;;  %v997_v9 = vadd.f32 %v996_v4, %v934_v6 }
 0x109   : > { %v998_v11 = vadd.f32 %v997_v9, %v935_v7  ;;  %v1268_v12 = vpop.f32.mrb[8].mxu0  ;;  %v865_v13 = vadd.f32 %v1265_v0, %v864_v8  ;;  %v1535_v14 = vpop.f32.mrb[8].mxu1 }
 0x10a   : > { %805 = vst [vmem:[%s1493_s11 + $0x50] sm:$0xff] %v1268_v12  ;;  %v572_v15 = vpop.f32.mrb[9].mxu0  ;;  %837 = vst [vmem:[%s1493_s11 + $0x150] sm:$0xff] %v1535_v14  ;;  %v1540_v16 = vpop.f32.mrb[9].mxu1  ;;  %v939_v27 = vmul.f32 %v1268_v12, %v1268_v12 }
 0x10b   : > { %803 = vst [vmem:[%s1493_s11 + $0x40] sm:$0xff] %v572_v15  ;;  %v866_v17 = vadd.f32 %v865_v13, %v572_v15  ;;  %v937_v18 = vmul.f32 %v572_v15, %v572_v15  ;;  %v999_v19 = vadd.f32 %v998_v11, %v936_v10  ;;  %v1269_v20 = vpop.f32.mrb[10].mxu0  ;;  %835 = vst [vmem:[%s1493_s11 + $0x140] sm:$0xff] %v1540_v16  ;;  %v1545_v21 = vpop.f32.mrb[10].mxu1 }
 0x10c   : > { %806 = vst [vmem:[%s1493_s11 + $0x58] sm:$0xff] %v1269_v20  ;;  %v575_v22 = vpop.f32.mrb[11].mxu0  ;;  %838 = vst [vmem:[%s1493_s11 + $0x158] sm:$0xff] %v1545_v21  ;;  %v1550_v23 = vpop.f32.mrb[11].mxu1  ;;  %v940_v30 = vmul.f32 %v1269_v20, %v1269_v20 }
 0x10d   : > { %v1000_v24 = vadd.f32 %v999_v19, %v937_v18  ;;  %804 = vst [vmem:[%s1493_s11 + $0x48] sm:$0xff] %v575_v22  ;;  %v867_v25 = vadd.f32 %v866_v17, %v575_v22  ;;  %v938_v26 = vmul.f32 %v575_v22, %v575_v22  ;;  %836 = vst [vmem:[%s1493_s11 + $0x148] sm:$0xff] %v1550_v23 }
 0x10f   : > { %v868_v28 = vadd.f32 %v1268_v12, %v867_v25  ;;  %v1001_v29 = vadd.f32 %v1000_v24, %v938_v26 }
 0x111   : > { %v1002_v31 = vadd.f32 %v1001_v29, %v939_v27  ;;  %v1272_v32 = vpop.f32.mrb[12].mxu0  ;;  %v869_v33 = vadd.f32 %v1269_v20, %v868_v28  ;;  %v1555_v34 = vpop.f32.mrb[12].mxu1 }
 0x112   : > { %809 = vst [vmem:[%s1493_s11 + $0x70] sm:$0xff] %v1272_v32  ;;  %v588_v35 = vpop.f32.mrb[13].mxu0  ;;  %841 = vst [vmem:[%s1493_s11 + $0x170] sm:$0xff] %v1555_v34  ;;  %v1560_v36 = vpop.f32.mrb[13].mxu1  ;;  %v943_v51 = vmul.f32 %v1272_v32, %v1272_v32 }
 0x113   : > { %807 = vst [vmem:[%s1493_s11 + $0x60] sm:$0xff] %v588_v35  ;;  %v870_v37 = vadd.f32 %v869_v33, %v588_v35  ;;  %v941_v38 = vmul.f32 %v588_v35, %v588_v35  ;;  %v1003_v39 = vadd.f32 %v1002_v31, %v940_v30  ;;  %v1273_v40 = vpop.f32.mrb[14].mxu0  ;;  %839 = vst [vmem:[%s1493_s11 + $0x160] sm:$0xff] %v1560_v36  ;;  %v1565_v42 = vpop.f32.mrb[14].mxu1 }
 0x114   : > { %810 = vst [vmem:[%s1493_s11 + $0x78] sm:$0xff] %v1273_v40  ;;  %v591_v44 = vpop.f32.mrb[15].mxu0  ;;  %842 = vst [vmem:[%s1493_s11 + $0x178] sm:$0xff] %v1565_v42  ;;  %v1570_v46 = vpop.f32.mrb[15].mxu1  ;;  %v944_v54 = vmul.f32 %v1273_v40, %v1273_v40 }
 0x115   : > { %v1004_v48 = vadd.f32 %v1003_v39, %v941_v38  ;;  %808 = vst [vmem:[%s1493_s11 + $0x68] sm:$0xff] %v591_v44  ;;  %v871_v49 = vadd.f32 %v870_v37, %v591_v44  ;;  %v942_v50 = vmul.f32 %v591_v44, %v591_v44  ;;  %840 = vst [vmem:[%s1493_s11 + $0x168] sm:$0xff] %v1570_v46 }
 0x117   : > { %v872_v52 = vadd.f32 %v1272_v32, %v871_v49  ;;  %v1005_v53 = vadd.f32 %v1004_v48, %v942_v50 }
 0x119   : > { %v1006_v55 = vadd.f32 %v1005_v53, %v943_v51  ;;  %v1276_v56 = vpop.f32.mrb[16].mxu0  ;;  %v873_v57 = vadd.f32 %v1273_v40, %v872_v52  ;;  %v1575_v59 = vpop.f32.mrb[16].mxu1 }
 0x11a   : > { %813 = vst [vmem:[%s1493_s11 + $0x90] sm:$0xff] %v1276_v56  ;;  %v604_v61 = vpop.f32.mrb[17].mxu0  ;;  %845 = vst [vmem:[%s1493_s11 + $0x190] sm:$0xff] %v1575_v59  ;;  %v1580_v62 = vpop.f32.mrb[17].mxu1  ;;  %v947_v11 = vmul.f32 %v1276_v56, %v1276_v56 }
 0x11b   : > { %811 = vst [vmem:[%s1493_s11 + $0x80] sm:$0xff] %v604_v61  ;;  %v874_v63 = vadd.f32 %v873_v57, %v604_v61  ;;  %v945_v0 = vmul.f32 %v604_v61, %v604_v61  ;;  %v1007_v2 = vadd.f32 %v1006_v55, %v944_v54  ;;  %v1277_v4 = vpop.f32.mrb[18].mxu0  ;;  %843 = vst [vmem:[%s1493_s11 + $0x180] sm:$0xff] %v1580_v62  ;;  %v1585_v5 = vpop.f32.mrb[18].mxu1 }
 0x11c   : > { %814 = vst [vmem:[%s1493_s11 + $0x98] sm:$0xff] %v1277_v4  ;;  %v607_v6 = vpop.f32.mrb[19].mxu0  ;;  %846 = vst [vmem:[%s1493_s11 + $0x198] sm:$0xff] %v1585_v5  ;;  %v1590_v7 = vpop.f32.mrb[19].mxu1  ;;  %v948_v15 = vmul.f32 %v1277_v4, %v1277_v4 }
 0x11d   : > { %v1008_v8 = vadd.f32 %v1007_v2, %v945_v0  ;;  %812 = vst [vmem:[%s1493_s11 + $0x88] sm:$0xff] %v607_v6  ;;  %v875_v9 = vadd.f32 %v874_v63, %v607_v6  ;;  %v946_v10 = vmul.f32 %v607_v6, %v607_v6  ;;  %844 = vst [vmem:[%s1493_s11 + $0x188] sm:$0xff] %v1590_v7 }
 0x11f   : > { %v876_v12 = vadd.f32 %v1276_v56, %v875_v9  ;;  %v1009_v13 = vadd.f32 %v1008_v8, %v946_v10 }
 0x121   : > { %v1010_v17 = vadd.f32 %v1009_v13, %v947_v11  ;;  %v1280_v18 = vpop.f32.mrb[20].mxu0  ;;  %v877_v19 = vadd.f32 %v1277_v4, %v876_v12  ;;  %v1595_v20 = vpop.f32.mrb[20].mxu1 }
 0x122   : > { %817 = vst [vmem:[%s1493_s11 + $0xb0] sm:$0xff] %v1280_v18  ;;  %v620_v22 = vpop.f32.mrb[21].mxu0  ;;  %849 = vst [vmem:[%s1493_s11 + $0x1b0] sm:$0xff] %v1595_v20  ;;  %v1600_v24 = vpop.f32.mrb[21].mxu1  ;;  %v951_v37 = vmul.f32 %v1280_v18, %v1280_v18 }
 0x123   : > { %815 = vst [vmem:[%s1493_s11 + $0xa0] sm:$0xff] %v620_v22  ;;  %v878_v25 = vadd.f32 %v877_v19, %v620_v22  ;;  %v949_v26 = vmul.f32 %v620_v22, %v620_v22  ;;  %v1011_v27 = vadd.f32 %v1010_v17, %v948_v15  ;;  %v1281_v28 = vpop.f32.mrb[22].mxu0  ;;  %847 = vst [vmem:[%s1493_s11 + $0x1a0] sm:$0xff] %v1600_v24  ;;  %v1605_v29 = vpop.f32.mrb[22].mxu1 }
 0x124   : > { %818 = vst [vmem:[%s1493_s11 + $0xb8] sm:$0xff] %v1281_v28  ;;  %v623_v30 = vpop.f32.mrb[23].mxu0  ;;  %850 = vst [vmem:[%s1493_s11 + $0x1b8] sm:$0xff] %v1605_v29  ;;  %v1610_v31 = vpop.f32.mrb[23].mxu1  ;;  %v952_v40 = vmul.f32 %v1281_v28, %v1281_v28 }
 0x125   : > { %v1012_v32 = vadd.f32 %v1011_v27, %v949_v26  ;;  %816 = vst [vmem:[%s1493_s11 + $0xa8] sm:$0xff] %v623_v30  ;;  %v879_v33 = vadd.f32 %v878_v25, %v623_v30  ;;  %v950_v35 = vmul.f32 %v623_v30, %v623_v30  ;;  %848 = vst [vmem:[%s1493_s11 + $0x1a8] sm:$0xff] %v1610_v31 }
 0x127   : > { %v880_v38 = vadd.f32 %v1280_v18, %v879_v33  ;;  %v1013_v39 = vadd.f32 %v1012_v32, %v950_v35 }
 0x129   : > { %v1014_v44 = vadd.f32 %v1013_v39, %v951_v37  ;;  %v1284_v48 = vpop.f32.mrb[24].mxu0  ;;  %v881_v49 = vadd.f32 %v1281_v28, %v880_v38  ;;  %v1615_v50 = vpop.f32.mrb[24].mxu1 }
 0x12a   : > { %821 = vst [vmem:[%s1493_s11 + $0xd0] sm:$0xff] %v1284_v48  ;;  %v636_v51 = vpop.f32.mrb[25].mxu0  ;;  %853 = vst [vmem:[%s1493_s11 + $0x1d0] sm:$0xff] %v1615_v50  ;;  %v1620_v52 = vpop.f32.mrb[25].mxu1  ;;  %v955_v6 = vmul.f32 %v1284_v48, %v1284_v48 }
 0x12b   : > { %819 = vst [vmem:[%s1493_s11 + $0xc0] sm:$0xff] %v636_v51  ;;  %v882_v53 = vadd.f32 %v881_v49, %v636_v51  ;;  %v953_v54 = vmul.f32 %v636_v51, %v636_v51  ;;  %v1015_v55 = vadd.f32 %v1014_v44, %v952_v40  ;;  %v1285_v56 = vpop.f32.mrb[26].mxu0  ;;  %851 = vst [vmem:[%s1493_s11 + $0x1c0] sm:$0xff] %v1620_v52  ;;  %v1625_v57 = vpop.f32.mrb[26].mxu1 }
 0x12c   : > { %822 = vst [vmem:[%s1493_s11 + $0xd8] sm:$0xff] %v1285_v56  ;;  %v639_v61 = vpop.f32.mrb[27].mxu0  ;;  %854 = vst [vmem:[%s1493_s11 + $0x1d8] sm:$0xff] %v1625_v57  ;;  %v1630_v63 = vpop.f32.mrb[27].mxu1  ;;  %v956_v10 = vmul.f32 %v1285_v56, %v1285_v56  ;;  %v961_v49 = vmul.f32 %v1500_v43, %v1500_v43 }
 0x12d   : > { %v1016_v0 = vadd.f32 %v1015_v55, %v953_v54  ;;  %820 = vst [vmem:[%s1493_s11 + $0xc8] sm:$0xff] %v639_v61  ;;  %v883_v2 = vadd.f32 %v882_v53, %v639_v61  ;;  %v954_v4 = vmul.f32 %v639_v61, %v639_v61  ;;  %852 = vst [vmem:[%s1493_s11 + $0x1c8] sm:$0xff] %v1630_v63 }
 0x12e   : > { %v963_v61 = vmul.f32 %v1495_v41, %v1495_v41 }
 0x12f   : > { %v884_v8 = vadd.f32 %v1284_v48, %v883_v2  ;;  %v1017_v9 = vadd.f32 %v1016_v0, %v954_v4  ;;  %v964_v4 = vmul.f32 %v1505_v45, %v1505_v45 }
 0x131   : > { %v1018_v11 = vadd.f32 %v1017_v9, %v955_v6  ;;  %v1288_v12 = vpop.f32.mrb[28].mxu0  ;;  %v885_v13 = vadd.f32 %v1285_v56, %v884_v8  ;;  %v1635_v15 = vpop.f32.mrb[28].mxu1  ;;  %v962_v56 = vmul.f32 %v1510_v47, %v1510_v47 }
 0x132   : > { %825 = vst [vmem:[%s1493_s11 + $0xf0] sm:$0xff] %v1288_v12  ;;  %v652_v17 = vpop.f32.mrb[29].mxu0  ;;  %857 = vst [vmem:[%s1493_s11 + $0x1f0] sm:$0xff] %v1635_v15  ;;  %v1640_v18 = vpop.f32.mrb[29].mxu1  ;;  %v959_v37 = vmul.f32 %v1288_v12, %v1288_v12 }
 0x133   : > { %823 = vst [vmem:[%s1493_s11 + $0xe0] sm:$0xff] %v652_v17  ;;  %v886_v19 = vadd.f32 %v885_v13, %v652_v17  ;;  %v957_v22 = vmul.f32 %v652_v17, %v652_v17  ;;  %v1019_v25 = vadd.f32 %v1018_v11, %v956_v10  ;;  %v1289_v26 = vpop.f32.mrb[30].mxu0  ;;  %855 = vst [vmem:[%s1493_s11 + $0x1e0] sm:$0xff] %v1640_v18  ;;  %v1645_v27 = vpop.f32.mrb[30].mxu1 }
 0x134   : > { %826 = vst [vmem:[%s1493_s11 + $0xf8] sm:$0xff] %v1289_v26  ;;  %v655_v28 = vpop.f32.mrb[31].mxu0  ;;  %858 = vst [vmem:[%s1493_s11 + $0x1f8] sm:$0xff] %v1645_v27  ;;  %v1650_v30 = vpop.f32.mrb[31].mxu1  ;;  %v960_v40 = vmul.f32 %v1289_v26, %v1289_v26 }
 0x135   : > { %v1020_v32 = vadd.f32 %v1019_v25, %v957_v22  ;;  %824 = vst [vmem:[%s1493_s11 + $0xe8] sm:$0xff] %v655_v28  ;;  %v887_v33 = vadd.f32 %v886_v19, %v655_v28  ;;  %v958_v35 = vmul.f32 %v655_v28, %v655_v28  ;;  %856 = vst [vmem:[%s1493_s11 + $0x1e8] sm:$0xff] %v1650_v30 }
 0x137   : > { %v888_v38 = vadd.f32 %v1288_v12, %v887_v33  ;;  %v1021_v39 = vadd.f32 %v1020_v32, %v958_v35  ;;  %v966_v12 = vmul.f32 %v1530_v3, %v1530_v3  ;;  %v970_v32 = vmul.f32 %v1550_v23, %v1550_v23 }
 0x139   : > { %v1022_v44 = vadd.f32 %v1021_v39, %v959_v37  ;;  %v889_v48 = vadd.f32 %v1289_v26, %v888_v38 }
 0x13b   : > { %v890_v51 = vadd.f32 %v889_v48, %v1500_v43  ;;  %v1023_v53 = vadd.f32 %v1022_v44, %v960_v40  ;;  %v965_v43 = vmul.f32 %v1520_v60, %v1520_v60  ;;  %v974_v48 = vmul.f32 %v1570_v46, %v1570_v46 }
 0x13d   : > { %v1024_v54 = vadd.f32 %v1023_v53, %v961_v49  ;;  %v891_v55 = vadd.f32 %v890_v51, %v1510_v47 }
 0x13f   : > { %v892_v0 = vadd.f32 %v1495_v41, %v891_v55  ;;  %v1025_v2 = vadd.f32 %v1024_v54, %v962_v56  ;;  %v967_v41 = vmul.f32 %v1515_v58, %v1515_v58 }
 0x141   : > { %v1026_v6 = vadd.f32 %v1025_v2, %v963_v61  ;;  %v893_v8 = vadd.f32 %v1505_v45, %v892_v0  ;;  %v968_v45 = vmul.f32 %v1525_v1, %v1525_v1  ;;  %v978_v0 = vmul.f32 %v1590_v7, %v1590_v7 }
 0x143   : > { %v894_v9 = vadd.f32 %v893_v8, %v1520_v60  ;;  %v1027_v10 = vadd.f32 %v1026_v6, %v964_v4  ;;  %v969_v60 = vmul.f32 %v1540_v16, %v1540_v16 }
 0x145   : > { %v1028_v11 = vadd.f32 %v1027_v10, %v965_v43  ;;  %v895_v47 = vadd.f32 %v894_v9, %v1530_v3 }
 0x147   : > { %v896_v13 = vadd.f32 %v1515_v58, %v895_v47  ;;  %v1029_v17 = vadd.f32 %v1028_v11, %v966_v12  ;;  %v971_v58 = vmul.f32 %v1535_v14, %v1535_v14  ;;  %v982_v11 = vmul.f32 %v1610_v31, %v1610_v31 }
 0x149   : > { %v1030_v19 = vadd.f32 %v1029_v17, %v967_v41  ;;  %v897_v22 = vadd.f32 %v1525_v1, %v896_v13  ;;  %v972_v1 = vmul.f32 %v1545_v21, %v1545_v21 }
 0x14b   : > { %v898_v25 = vadd.f32 %v897_v22, %v1540_v16  ;;  %v1031_v26 = vadd.f32 %v1030_v19, %v968_v45  ;;  %v973_v16 = vmul.f32 %v1560_v36, %v1560_v36  ;;  %v986_v22 = vmul.f32 %v1630_v63, %v1630_v63 }
 0x14d   : > { %v1032_v28 = vadd.f32 %v1031_v26, %v969_v60  ;;  %v899_v3 = vadd.f32 %v898_v25, %v1550_v23 }
 0x14f   : > { %v900_v33 = vadd.f32 %v1535_v14, %v899_v3  ;;  %v1033_v35 = vadd.f32 %v1032_v28, %v970_v32  ;;  %v975_v14 = vmul.f32 %v1555_v34, %v1555_v34  ;;  %v989_v28 = vmul.f32 %v1640_v18, %v1640_v18 }
 0x151   : > { %v1034_v37 = vadd.f32 %v1033_v35, %v971_v58  ;;  %v901_v38 = vadd.f32 %v1545_v21, %v900_v33  ;;  %v976_v21 = vmul.f32 %v1565_v42, %v1565_v42  ;;  %v991_v33 = vmul.f32 %v1635_v15, %v1635_v15 }
 0x153   : > { %v902_v39 = vadd.f32 %v901_v38, %v1560_v36  ;;  %v1035_v40 = vadd.f32 %v1034_v37, %v972_v1  ;;  %v977_v36 = vmul.f32 %v1580_v62, %v1580_v62 }
 0x155   : > { %v1036_v44 = vadd.f32 %v1035_v40, %v973_v16  ;;  %v903_v23 = vadd.f32 %v902_v39, %v1570_v46 }
 0x157   : > { %v904_v49 = vadd.f32 %v1555_v34, %v903_v23  ;;  %v1037_v51 = vadd.f32 %v1036_v44, %v974_v48  ;;  %v979_v34 = vmul.f32 %v1575_v59, %v1575_v59 }
 0x159   : > { %v1038_v53 = vadd.f32 %v1037_v51, %v975_v14  ;;  %v905_v54 = vadd.f32 %v1565_v42, %v904_v49  ;;  %v980_v42 = vmul.f32 %v1585_v5, %v1585_v5 }
 0x15b   : > { %v906_v55 = vadd.f32 %v905_v54, %v1580_v62  ;;  %v1039_v56 = vadd.f32 %v1038_v53, %v976_v21  ;;  %v981_v62 = vmul.f32 %v1600_v24, %v1600_v24 }
 0x15d   : > { %v1040_v61 = vadd.f32 %v1039_v56, %v977_v36  ;;  %v907_v46 = vadd.f32 %v906_v55, %v1590_v7 }
 0x15f   : > { %v908_v2 = vadd.f32 %v1575_v59, %v907_v46  ;;  %v1041_v4 = vadd.f32 %v1040_v61, %v978_v0  ;;  %v983_v59 = vmul.f32 %v1595_v20, %v1595_v20 }
 0x161   : > { %v1042_v6 = vadd.f32 %v1041_v4, %v979_v34  ;;  %v909_v8 = vadd.f32 %v1585_v5, %v908_v2  ;;  %v984_v5 = vmul.f32 %v1605_v29, %v1605_v29 }
 0x163   : > { %v910_v43 = vadd.f32 %v909_v8, %v1600_v24  ;;  %v1043_v9 = vadd.f32 %v1042_v6, %v980_v42  ;;  %v985_v24 = vmul.f32 %v1620_v52, %v1620_v52 }
 0x165   : > { %v1044_v10 = vadd.f32 %v1043_v9, %v981_v62  ;;  %v911_v7 = vadd.f32 %v910_v43, %v1610_v31 }
 0x167   : > { %v912_v47 = vadd.f32 %v1595_v20, %v911_v7  ;;  %v1045_v12 = vadd.f32 %v1044_v10, %v982_v11  ;;  %v987_v20 = vmul.f32 %v1615_v50, %v1615_v50 }
 0x169   : > { %v1046_v41 = vadd.f32 %v1045_v12, %v983_v59  ;;  %v913_v13 = vadd.f32 %v1605_v29, %v912_v47  ;;  %v988_v29 = vmul.f32 %v1625_v57, %v1625_v57 }
 0x16b   : > { %v914_v17 = vadd.f32 %v913_v13, %v1620_v52  ;;  %v1047_v45 = vadd.f32 %v1046_v41, %v984_v5 }
 0x16d   : > { %v1048_v19 = vadd.f32 %v1047_v45, %v985_v24  ;;  %v915_v31 = vadd.f32 %v914_v17, %v1630_v63 }
 0x16f   : > { %v916_v60 = vadd.f32 %v1615_v50, %v915_v31  ;;  %v1049_v25 = vadd.f32 %v1048_v19, %v986_v22  ;;  %v990_v50 = vmul.f32 %v1650_v30, %v1650_v30 }
 0x171   : > { %v1050_v26 = vadd.f32 %v1049_v25, %v987_v20  ;;  %v917_v52 = vadd.f32 %v1625_v57, %v916_v60  ;;  %v992_v57 = vmul.f32 %v1645_v27, %v1645_v27 }
 0x173   : > { %v918_v3 = vadd.f32 %v917_v52, %v1640_v18  ;;  %v1051_v63 = vadd.f32 %v1050_v26, %v988_v29 }
 0x175   : > { %v1052_v32 = vadd.f32 %v1051_v63, %v989_v28  ;;  %v919_v58 = vadd.f32 %v918_v3, %v1650_v30 }
 0x177   : > { %v920_v35 = vadd.f32 %v1635_v15, %v919_v58  ;;  %v1053_v1 = vadd.f32 %v1052_v32, %v990_v50 }
 0x179   : > { %v921_v37 = vadd.f32 %v1645_v27, %v920_v35  ;;  %v1054_v18 = vadd.f32 %v1053_v1, %v991_v33 }
 0x17b   : > { %v922_v38 = vrot.slane %v921_v37, 4  ;;  %v1055_v16 = vadd.f32 %v1054_v18, %v992_v57 }
 0x17d   : > { %v923_v39 = vadd.f32 %v922_v38, %v921_v37  ;;  %v1056_v40 = vrot.slane %v1055_v16, 4 }
 0x17f   : > { %v924_v44 = vrot.slane %v923_v39, 2  ;;  %v1057_v30 = vadd.f32 %v1056_v40, %v1055_v16 }
 0x181   : > { %v925_v23 = vadd.f32 %v924_v44, %v923_v39  ;;  %v1058_v48 = vrot.slane %v1057_v30, 2 }
 0x183   : > { %v926_v14 = vrot.slane %v925_v23, 1  ;;  %v1059_v15 = vadd.f32 %v1058_v48, %v1057_v30 }
 0x185   : > { %v927_v49 = vadd.f32 %v926_v14, %v925_v23  ;;  %v1060_v51 = vrot.slane %v1059_v15, 1 }
 0x187   : > { %928 = vst [vmem:[%s184_s17] sm:$0x1] %v927_v49  ;;  %v1061_v27 = vadd.f32 %v1060_v51, %v1059_v15 }
 0x189   : > { %1062 = vst [vmem:[%s184_s17 + $0x1] sm:$0x1] %v1061_v27 }
 0x18a PF: > { %s14_s12 = sadd.s32 1, %s1392_s12  }
 0x18b   : > { %p11_p5 = scmp.ge.s32.totalorder %s14_s12, 4  }
 0x18d   :  { %13 = sbr.rel (!%p11_p5) target bundleno = 1 (0x1), region = 70 }

// kernel: pub_forward.5
= control target key start
LH: loop header
LB: loop body
LE: loop exit
PB: predicated region body
PF: predicated region fallthrough
CT: control target
= control target key end

     0   :  { %s1188_s12 = smov 0   ;;  %s1447_s0 = inlined_call_operand.vmem [shape: f32[1024,128], index: 0, kind: input, shape index: {}]   ;;  %s1448_s1 = inlined_call_operand.vmem [shape: f32[1,128], index: 1, kind: input, shape index: {}]   ;;  %s1449_s2 = inlined_call_operand.vmem [shape: f32[1,128], index: 2, kind: input, shape index: {}]   ;;  %s1450_s3 = inlined_call_operand.vmem [shape: bf16[1024,128], index: 3, kind: output, shape index: {}]  }
   0x1 LB: > { %s820_s13 = sadd.s32 4294967295, %s1166_s12   ;;  %p824_p0 = scmp.ge.s32.totalorder %s1166_s12, 1  ;;  %s1166_s12 = sphi %s1188_s12, %s13_s12  }
   0x2   : > { %p138_p1 = scmp.lt.s32.totalorder %s1166_s12, 3 }
   0x4   : > { %p139_p2 = pnand %p824_p0, %p138_p1 }
   0x5   : > { %s825_s14 = sshll.u32 (!%p139_p2), %s820_s13, 6  ;;  %v1202_v0 = vld [vmem:[%s1448_s1] ss:$0 sm:$0xff] (!%p139_p2) }
   0x6   : > { %142 = sbr.rel (%p139_p2) target bundleno = 79 (0x4f), region = 32  ;;  %p163_p3 = scmp.lt.s32.totalorder (!%p139_p2), %s825_s14, 127  ;;  %v1212_v1 = vld [vmem:[%s1449_s2] ss:$0 sm:$0xff] (!%p139_p2) }
   0xd   : > { %s1452_s14 = smov (!%p163_p3, %s825_s14), 127 }
   0xe   : > { %s826_s15 = sshll.u32 %s1452_s14, 3  ;;  %s828_s23 = sshll.u32 %s1452_s14, 2 }
   0xf   : > { %s1207_s20 = scalar_lea.vmem %s1447_s0, %s826_s15  ;;  %s1244_s26 = scalar_lea.vmem %s1450_s3, %s828_s23 }
  0x10   : > { %v174_v2 = vld [vmem:[%s1207_s20] sm:$0xff]  ;;  %v175_v3 = vld [vmem:[%s1207_s20 + $0x8] sm:$0xff]  ;;  %v176_v4 = vld [vmem:[%s1207_s20 + $0x10] sm:$0xff] }
  0x11   : > { %v245_v5 = vmul.f32 %v1202_v0, %v174_v2  ;;  %v246_v6 = vmul.f32 %v1202_v0, %v175_v3  ;;  %v177_v7 = vld [vmem:[%s1207_s20 + $0x18] sm:$0xff]  ;;  %v247_v8 = vmul.f32 %v1202_v0, %v176_v4  ;;  %v178_v9 = vld [vmem:[%s1207_s20 + $0x20] sm:$0xff]  ;;  %v179_v10 = vld [vmem:[%s1207_s20 + $0x28] sm:$0xff] }
  0x12   : > { %v248_v11 = vmul.f32 %v1202_v0, %v177_v7  ;;  %v249_v12 = vmul.f32 %v1202_v0, %v178_v9  ;;  %v250_v13 = vmul.f32 %v1202_v0, %v179_v10  ;;  %v180_v14 = vld [vmem:[%s1207_s20 + $0x30] sm:$0xff]  ;;  %v181_v15 = vld [vmem:[%s1207_s20 + $0x38] sm:$0xff]  ;;  %v182_v24 = vld [vmem:[%s1207_s20 + $0x40] sm:$0xff] }
  0x13   : > { %v316_v16 = vadd.f32 %v1212_v1, %v245_v5  ;;  %v317_v17 = vadd.f32 %v1212_v1, %v246_v6  ;;  %v318_v18 = vadd.f32 %v1212_v1, %v247_v8  ;;  %v251_v19 = vmul.f32 %v1202_v0, %v180_v14  ;;  %v183_v25 = vld [vmem:[%s1207_s20 + $0x48] sm:$0xff]  ;;  %v184_v30 = vld [vmem:[%s1207_s20 + $0x50] sm:$0xff]  ;;  %v185_v35 = vld [vmem:[%s1207_s20 + $0x58] sm:$0xff] }
  0x14   : > { %v319_v20 = vadd.f32 %v1212_v1, %v248_v11  ;;  %v320_v21 = vadd.f32 %v1212_v1, %v249_v12  ;;  %v321_v22 = vadd.f32 %v1212_v1, %v250_v13  ;;  %v252_v23 = vmul.f32 %v1202_v0, %v181_v15  ;;  %v186_v36 = vld [vmem:[%s1207_s20 + $0x60] sm:$0xff]  ;;  %v187_v41 = vld [vmem:[%s1207_s20 + $0x68] sm:$0xff]  ;;  %v188_v42 = vld [vmem:[%s1207_s20 + $0x70] sm:$0xff] }
  0x15   : > { %v380_v26 = vmax.f32 %v316_v16, 0.0  ;;  %v381_v27 = vmax.f32 %v317_v17, 0.0  ;;  %v382_v28 = vmax.f32 %v318_v18, 0.0  ;;  %v322_v29 = vadd.f32 %v1212_v1, %v251_v19  ;;  %v189_v51 = vld [vmem:[%s1207_s20 + $0x78] sm:$0xff]  ;;  %v190_v56 = vld [vmem:[%s1207_s20 + $0x80] sm:$0xff]  ;;  %v191_v61 = vld [vmem:[%s1207_s20 + $0x88] sm:$0xff] }
  0x16   : > { %v383_v31 = vmax.f32 %v319_v20, 0.0  ;;  %v384_v32 = vmax.f32 %v320_v21, 0.0  ;;  %v385_v33 = vmax.f32 %v321_v22, 0.0  ;;  %v323_v34 = vadd.f32 %v1212_v1, %v252_v23  ;;  %v192_v4 = vld [vmem:[%s1207_s20 + $0x90] sm:$0xff]  ;;  %v193_v5 = vld [vmem:[%s1207_s20 + $0x98] sm:$0xff]  ;;  %v194_v10 = vld [vmem:[%s1207_s20 + $0xa0] sm:$0xff] }
  0x17   : > { %v964_v37 = vpack.c.bf16 %v381_v27, %v380_v26  ;;  %v386_v38 = vmax.f32 %v322_v29, 0.0  ;;  %v253_v39 = vmul.f32 %v1202_v0, %v182_v24  ;;  %v254_v40 = vmul.f32 %v1202_v0, %v183_v25  ;;  %v195_v15 = vld [vmem:[%s1207_s20 + $0xa8] sm:$0xff]  ;;  %v196_v20 = vld [vmem:[%s1207_s20 + $0xb0] sm:$0xff]  ;;  %v197_v25 = vld [vmem:[%s1207_s20 + $0xb8] sm:$0xff] }
  0x18   : > { %v969_v43 = vpack.c.bf16 %v383_v31, %v382_v28  ;;  %v974_v44 = vpack.c.bf16 %v385_v33, %v384_v32  ;;  %v387_v45 = vmax.f32 %v323_v34, 0.0  ;;  %v255_v46 = vmul.f32 %v1202_v0, %v184_v30  ;;  %v198_v30 = vld [vmem:[%s1207_s20 + $0xc0] sm:$0xff] }
  0x19   : > { %965 = vst [vmem:[%s1244_s26] sm:$0xff] %v964_v37   ;;  %v324_v47 = vadd.f32 %v1212_v1, %v253_v39  ;;  %v325_v48 = vadd.f32 %v1212_v1, %v254_v40  ;;  %v256_v49 = vmul.f32 %v1202_v0, %v185_v35  ;;  %v257_v50 = vmul.f32 %v1202_v0, %v186_v36  ;;  %v199_v35 = vld [vmem:[%s1207_s20 + $0xc8] sm:$0xff]  ;;  %v200_v40 = vld [vmem:[%s1207_s20 + $0xd0] sm:$0xff] }
  0x1a   : > { %1121 = vst [vmem:[%s1244_s26 + $0x8] sm:$0xff] %v969_v43   ;;  %1122 = vst [vmem:[%s1244_s26 + $0x10] sm:$0xff] %v974_v44   ;;  %v979_v52 = vpack.c.bf16 %v387_v45, %v386_v38  ;;  %v326_v53 = vadd.f32 %v1212_v1, %v255_v46  ;;  %v258_v54 = vmul.f32 %v1202_v0, %v187_v41  ;;  %v201_v41 = vld [vmem:[%s1207_s20 + $0xd8] sm:$0xff]  ;;  %v202_v46 = vld [vmem:[%s1207_s20 + $0xe0] sm:$0xff] }
  0x1b   : > { %v259_v55 = vmul.f32 %v1202_v0, %v188_v42  ;;  %v388_v57 = vmax.f32 %v324_v47, 0.0  ;;  %v389_v58 = vmax.f32 %v325_v48, 0.0  ;;  %v327_v59 = vadd.f32 %v1212_v1, %v256_v49 }
  0x1c   : > { %v328_v60 = vadd.f32 %v1212_v1, %v257_v50  ;;  %1123 = vst [vmem:[%s1244_s26 + $0x18] sm:$0xff] %v979_v52   ;;  %v390_v62 = vmax.f32 %v326_v53, 0.0  ;;  %v329_v63 = vadd.f32 %v1212_v1, %v258_v54  ;;  %v260_v2 = vmul.f32 %v1202_v0, %v189_v51  ;;  %v203_v51 = vld [vmem:[%s1207_s20 + $0xe8] sm:$0xff] }
  0x1d   : > { %v330_v3 = vadd.f32 %v1212_v1, %v259_v55  ;;  %v984_v6 = vpack.c.bf16 %v389_v58, %v388_v57  ;;  %v391_v7 = vmax.f32 %v327_v59, 0.0  ;;  %v261_v9 = vmul.f32 %v1202_v0, %v190_v56  ;;  %v204_v56 = vld [vmem:[%s1207_s20 + $0xf0] sm:$0xff] }
  0x1e   : > { %v392_v8 = vmax.f32 %v328_v60, 0.0  ;;  %v393_v11 = vmax.f32 %v329_v63, 0.0  ;;  %v331_v12 = vadd.f32 %v1212_v1, %v260_v2  ;;  %v262_v14 = vmul.f32 %v1202_v0, %v191_v61  ;;  %v205_v61 = vld [vmem:[%s1207_s20 + $0xf8] sm:$0xff] }
  0x1f   : > { %v394_v13 = vmax.f32 %v330_v3, 0.0  ;;  %1124 = vst [vmem:[%s1244_s26 + $0x20] sm:$0xff] %v984_v6   ;;  %v989_v16 = vpack.c.bf16 %v391_v7, %v390_v62  ;;  %v332_v17 = vadd.f32 %v1212_v1, %v261_v9  ;;  %v263_v18 = vmul.f32 %v1202_v0, %v192_v4  ;;  %v206_v4 = vld [vmem:[%s1207_s20 + $0x100] sm:$0xff]  ;;  %v207_v9 = vld [vmem:[%s1207_s20 + $0x108] sm:$0xff] }
  0x20   : > { %v264_v19 = vmul.f32 %v1202_v0, %v193_v5  ;;  %v994_v21 = vpack.c.bf16 %v393_v11, %v392_v8  ;;  %v395_v22 = vmax.f32 %v331_v12, 0.0  ;;  %v333_v23 = vadd.f32 %v1212_v1, %v262_v14  ;;  %v208_v14 = vld [vmem:[%s1207_s20 + $0x110] sm:$0xff] }
  0x21   : > { %v265_v24 = vmul.f32 %v1202_v0, %v194_v10  ;;  %1125 = vst [vmem:[%s1244_s26 + $0x28] sm:$0xff] %v989_v16   ;;  %v396_v26 = vmax.f32 %v332_v17, 0.0  ;;  %v334_v27 = vadd.f32 %v1212_v1, %v263_v18  ;;  %v266_v29 = vmul.f32 %v1202_v0, %v195_v15  ;;  %v209_v15 = vld [vmem:[%s1207_s20 + $0x118] sm:$0xff] }
  0x22   : > { %v335_v28 = vadd.f32 %v1212_v1, %v264_v19  ;;  %1126 = vst [vmem:[%s1244_s26 + $0x30] sm:$0xff] %v994_v21   ;;  %v999_v31 = vpack.c.bf16 %v395_v22, %v394_v13  ;;  %v397_v32 = vmax.f32 %v333_v23, 0.0  ;;  %v267_v34 = vmul.f32 %v1202_v0, %v196_v20  ;;  %v210_v20 = vld [vmem:[%s1207_s20 + $0x120] sm:$0xff] }
  0x23   : > { %v336_v33 = vadd.f32 %v1212_v1, %v265_v24  ;;  %v398_v36 = vmax.f32 %v334_v27, 0.0  ;;  %v337_v38 = vadd.f32 %v1212_v1, %v266_v29  ;;  %v268_v39 = vmul.f32 %v1202_v0, %v197_v25  ;;  %v211_v25 = vld [vmem:[%s1207_s20 + $0x128] sm:$0xff] }
  0x24   : > { %v399_v37 = vmax.f32 %v335_v28, 0.0  ;;  %1127 = vst [vmem:[%s1244_s26 + $0x38] sm:$0xff] %v999_v31   ;;  %v1004_v42 = vpack.c.bf16 %v397_v32, %v396_v26  ;;  %v338_v44 = vadd.f32 %v1212_v1, %v267_v34  ;;  %v269_v45 = vmul.f32 %v1202_v0, %v198_v30  ;;  %v212_v30 = vld [vmem:[%s1207_s20 + $0x130] sm:$0xff] }
  0x25   : > { %v400_v43 = vmax.f32 %v336_v33, 0.0  ;;  %v401_v48 = vmax.f32 %v337_v38, 0.0  ;;  %v339_v49 = vadd.f32 %v1212_v1, %v268_v39  ;;  %v270_v50 = vmul.f32 %v1202_v0, %v199_v35  ;;  %v213_v35 = vld [vmem:[%s1207_s20 + $0x138] sm:$0xff] }
  0x26   : > { %v1009_v47 = vpack.c.bf16 %v399_v37, %v398_v36  ;;  %1128 = vst [vmem:[%s1244_s26 + $0x40] sm:$0xff] %v1004_v42   ;;  %v402_v52 = vmax.f32 %v338_v44, 0.0  ;;  %v340_v53 = vadd.f32 %v1212_v1, %v269_v45  ;;  %v271_v54 = vmul.f32 %v1202_v0, %v200_v40  ;;  %v214_v40 = vld [vmem:[%s1207_s20 + $0x140] sm:$0xff]  ;;  %v215_v45 = vld [vmem:[%s1207_s20 + $0x148] sm:$0xff] }
  0x27   : > { %v272_v55 = vmul.f32 %v1202_v0, %v201_v41  ;;  %v1014_v57 = vpack.c.bf16 %v401_v48, %v400_v43  ;;  %v403_v58 = vmax.f32 %v339_v49, 0.0  ;;  %v341_v59 = vadd.f32 %v1212_v1, %v270_v50  ;;  %v216_v50 = vld [vmem:[%s1207_s20 + $0x150] sm:$0xff] }
  0x28   : > { %1129 = vst [vmem:[%s1244_s26 + $0x48] sm:$0xff] %v1009_v47   ;;  %v273_v60 = vmul.f32 %v1202_v0, %v202_v46  ;;  %v404_v62 = vmax.f32 %v340_v53, 0.0  ;;  %v342_v63 = vadd.f32 %v1212_v1, %v271_v54  ;;  %v274_v3 = vmul.f32 %v1202_v0, %v203_v51  ;;  %v217_v51 = vld [vmem:[%s1207_s20 + $0x158] sm:$0xff] }
  0x29   : > { %v343_v2 = vadd.f32 %v1212_v1, %v272_v55  ;;  %1130 = vst [vmem:[%s1244_s26 + $0x50] sm:$0xff] %v1014_v57   ;;  %v1019_v5 = vpack.c.bf16 %v403_v58, %v402_v52  ;;  %v405_v6 = vmax.f32 %v341_v59, 0.0  ;;  %v275_v8 = vmul.f32 %v1202_v0, %v204_v56  ;;  %v218_v56 = vld [vmem:[%s1207_s20 + $0x160] sm:$0xff] }
  0x2a   : > { %v344_v7 = vadd.f32 %v1212_v1, %v273_v60  ;;  %v406_v10 = vmax.f32 %v342_v63, 0.0  ;;  %v345_v12 = vadd.f32 %v1212_v1, %v274_v3  ;;  %v276_v13 = vmul.f32 %v1202_v0, %v205_v61  ;;  %v219_v61 = vld [vmem:[%s1207_s20 + $0x168] sm:$0xff] }
  0x2b   : > { %v407_v11 = vmax.f32 %v343_v2, 0.0  ;;  %1131 = vst [vmem:[%s1244_s26 + $0x58] sm:$0xff] %v1019_v5   ;;  %v1024_v16 = vpack.c.bf16 %v405_v6, %v404_v62  ;;  %v346_v18 = vadd.f32 %v1212_v1, %v275_v8  ;;  %v277_v19 = vmul.f32 %v1202_v0, %v206_v4  ;;  %v220_v4 = vld [vmem:[%s1207_s20 + $0x170] sm:$0xff] }
  0x2c   : > { %v408_v17 = vmax.f32 %v344_v7, 0.0  ;;  %v409_v22 = vmax.f32 %v345_v12, 0.0  ;;  %v347_v23 = vadd.f32 %v1212_v1, %v276_v13  ;;  %v278_v24 = vmul.f32 %v1202_v0, %v207_v9  ;;  %v221_v9 = vld [vmem:[%s1207_s20 + $0x178] sm:$0xff] }
  0x2d   : > { %v1029_v21 = vpack.c.bf16 %v407_v11, %v406_v10  ;;  %1132 = vst [vmem:[%s1244_s26 + $0x60] sm:$0xff] %v1024_v16   ;;  %v410_v26 = vmax.f32 %v346_v18, 0.0  ;;  %v348_v27 = vadd.f32 %v1212_v1, %v277_v19  ;;  %v279_v28 = vmul.f32 %v1202_v0, %v208_v14  ;;  %v222_v14 = vld [vmem:[%s1207_s20 + $0x180] sm:$0xff]  ;;  %v223_v19 = vld [vmem:[%s1207_s20 + $0x188] sm:$0xff] }
  0x2e   : > { %v280_v29 = vmul.f32 %v1202_v0, %v209_v15  ;;  %v1034_v31 = vpack.c.bf16 %v409_v22, %v408_v17  ;;  %v411_v32 = vmax.f32 %v347_v23, 0.0  ;;  %v349_v33 = vadd.f32 %v1212_v1, %v278_v24  ;;  %v224_v24 = vld [vmem:[%s1207_s20 + $0x190] sm:$0xff] }
  0x2f   : > { %1133 = vst [vmem:[%s1244_s26 + $0x68] sm:$0xff] %v1029_v21   ;;  %v281_v34 = vmul.f32 %v1202_v0, %v210_v20  ;;  %v412_v36 = vmax.f32 %v348_v27, 0.0  ;;  %v350_v37 = vadd.f32 %v1212_v1, %v279_v28  ;;  %v282_v39 = vmul.f32 %v1202_v0, %v211_v25  ;;  %v225_v25 = vld [vmem:[%s1207_s20 + $0x198] sm:$0xff] }
  0x30   : > { %v351_v38 = vadd.f32 %v1212_v1, %v280_v29  ;;  %1134 = vst [vmem:[%s1244_s26 + $0x70] sm:$0xff] %v1034_v31   ;;  %v1039_v41 = vpack.c.bf16 %v411_v32, %v410_v26  ;;  %v413_v42 = vmax.f32 %v349_v33, 0.0  ;;  %v283_v44 = vmul.f32 %v1202_v0, %v212_v30  ;;  %v226_v30 = vld [vmem:[%s1207_s20 + $0x1a0] sm:$0xff] }
  0x31   : > { %v352_v43 = vadd.f32 %v1212_v1, %v281_v34  ;;  %v414_v46 = vmax.f32 %v350_v37, 0.0  ;;  %v353_v48 = vadd.f32 %v1212_v1, %v282_v39  ;;  %v284_v49 = vmul.f32 %v1202_v0, %v213_v35  ;;  %v227_v35 = vld [vmem:[%s1207_s20 + $0x1a8] sm:$0xff] }
  0x32   : > { %v415_v47 = vmax.f32 %v351_v38, 0.0  ;;  %1135 = vst [vmem:[%s1244_s26 + $0x78] sm:$0xff] %v1039_v41   ;;  %v1044_v52 = vpack.c.bf16 %v413_v42, %v412_v36  ;;  %v354_v54 = vadd.f32 %v1212_v1, %v283_v44  ;;  %v285_v55 = vmul.f32 %v1202_v0, %v214_v40  ;;  %v228_v40 = vld [vmem:[%s1207_s20 + $0x1b0] sm:$0xff] }
  0x33   : > { %v416_v53 = vmax.f32 %v352_v43, 0.0  ;;  %v417_v58 = vmax.f32 %v353_v48, 0.0  ;;  %v355_v59 = vadd.f32 %v1212_v1, %v284_v49  ;;  %v286_v60 = vmul.f32 %v1202_v0, %v215_v45  ;;  %v229_v45 = vld [vmem:[%s1207_s20 + $0x1b8] sm:$0xff] }
  0x34   : > { %v1049_v57 = vpack.c.bf16 %v415_v47, %v414_v46  ;;  %1136 = vst [vmem:[%s1244_s26 + $0x80] sm:$0xff] %v1044_v52   ;;  %v418_v62 = vmax.f32 %v354_v54, 0.0  ;;  %v356_v63 = vadd.f32 %v1212_v1, %v285_v55  ;;  %v287_v2 = vmul.f32 %v1202_v0, %v216_v50  ;;  %v230_v50 = vld [vmem:[%s1207_s20 + $0x1c0] sm:$0xff]  ;;  %v231_v55 = vld [vmem:[%s1207_s20 + $0x1c8] sm:$0xff] }
  0x35   : > { %v288_v3 = vmul.f32 %v1202_v0, %v217_v51  ;;  %v1054_v5 = vpack.c.bf16 %v417_v58, %v416_v53  ;;  %v419_v6 = vmax.f32 %v355_v59, 0.0  ;;  %v357_v7 = vadd.f32 %v1212_v1, %v286_v60  ;;  %v232_v60 = vld [vmem:[%s1207_s20 + $0x1d0] sm:$0xff] }
  0x36   : > { %1137 = vst [vmem:[%s1244_s26 + $0x88] sm:$0xff] %v1049_v57   ;;  %v289_v8 = vmul.f32 %v1202_v0, %v218_v56  ;;  %v420_v10 = vmax.f32 %v356_v63, 0.0  ;;  %v358_v11 = vadd.f32 %v1212_v1, %v287_v2  ;;  %v290_v13 = vmul.f32 %v1202_v0, %v219_v61  ;;  %v233_v61 = vld [vmem:[%s1207_s20 + $0x1d8] sm:$0xff] }
  0x37   : > { %v359_v12 = vadd.f32 %v1212_v1, %v288_v3  ;;  %1138 = vst [vmem:[%s1244_s26 + $0x90] sm:$0xff] %v1054_v5   ;;  %v1059_v15 = vpack.c.bf16 %v419_v6, %v418_v62  ;;  %v421_v16 = vmax.f32 %v357_v7, 0.0  ;;  %v291_v18 = vmul.f32 %v1202_v0, %v220_v4  ;;  %v234_v4 = vld [vmem:[%s1207_s20 + $0x1e0] sm:$0xff] }
  0x38   : > { %v360_v17 = vadd.f32 %v1212_v1, %v289_v8  ;;  %v422_v20 = vmax.f32 %v358_v11, 0.0  ;;  %v361_v22 = vadd.f32 %v1212_v1, %v290_v13  ;;  %v292_v23 = vmul.f32 %v1202_v0, %v221_v9  ;;  %v235_v9 = vld [vmem:[%s1207_s20 + $0x1e8] sm:$0xff] }
  0x39   : > { %v423_v21 = vmax.f32 %v359_v12, 0.0  ;;  %1139 = vst [vmem:[%s1244_s26 + $0x98] sm:$0xff] %v1059_v15   ;;  %v1064_v26 = vpack.c.bf16 %v421_v16, %v420_v10  ;;  %v362_v28 = vadd.f32 %v1212_v1, %v291_v18  ;;  %v293_v29 = vmul.f32 %v1202_v0, %v222_v14  ;;  %v236_v14 = vld [vmem:[%s1207_s20 + $0x1f0] sm:$0xff] }
  0x3a   : > { %v424_v27 = vmax.f32 %v360_v17, 0.0  ;;  %v425_v32 = vmax.f32 %v361_v22, 0.0  ;;  %v363_v33 = vadd.f32 %v1212_v1, %v292_v23  ;;  %v294_v34 = vmul.f32 %v1202_v0, %v223_v19  ;;  %v237_v19 = vld [vmem:[%s1207_s20 + $0x1f8] sm:$0xff] }
  0x3b   : > { %v1069_v31 = vpack.c.bf16 %v423_v21, %v422_v20  ;;  %1140 = vst [vmem:[%s1244_s26 + $0xa0] sm:$0xff] %v1064_v26   ;;  %v426_v36 = vmax.f32 %v362_v28, 0.0  ;;  %v364_v37 = vadd.f32 %v1212_v1, %v293_v29  ;;  %v295_v38 = vmul.f32 %v1202_v0, %v224_v24 }
  0x3c   : > { %v296_v39 = vmul.f32 %v1202_v0, %v225_v25  ;;  %v1074_v41 = vpack.c.bf16 %v425_v32, %v424_v27  ;;  %v427_v42 = vmax.f32 %v363_v33, 0.0  ;;  %v365_v43 = vadd.f32 %v1212_v1, %v294_v34 }
  0x3d   : > { %1141 = vst [vmem:[%s1244_s26 + $0xa8] sm:$0xff] %v1069_v31   ;;  %v297_v44 = vmul.f32 %v1202_v0, %v226_v30  ;;  %v428_v46 = vmax.f32 %v364_v37, 0.0  ;;  %v366_v47 = vadd.f32 %v1212_v1, %v295_v38  ;;  %v298_v49 = vmul.f32 %v1202_v0, %v227_v35 }
  0x3e   : > { %v367_v48 = vadd.f32 %v1212_v1, %v296_v39  ;;  %1142 = vst [vmem:[%s1244_s26 + $0xb0] sm:$0xff] %v1074_v41   ;;  %v1079_v51 = vpack.c.bf16 %v427_v42, %v426_v36  ;;  %v429_v52 = vmax.f32 %v365_v43, 0.0  ;;  %v299_v54 = vmul.f32 %v1202_v0, %v228_v40 }
  0x3f   : > { %v368_v53 = vadd.f32 %v1212_v1, %v297_v44  ;;  %v430_v56 = vmax.f32 %v366_v47, 0.0  ;;  %v369_v58 = vadd.f32 %v1212_v1, %v298_v49  ;;  %v300_v59 = vmul.f32 %v1202_v0, %v229_v45 }
  0x40   : > { %v431_v57 = vmax.f32 %v367_v48, 0.0  ;;  %1143 = vst [vmem:[%s1244_s26 + $0xb8] sm:$0xff] %v1079_v51   ;;  %v1084_v62 = vpack.c.bf16 %v429_v52, %v428_v46  ;;  %v370_v2 = vadd.f32 %v1212_v1, %v299_v54  ;;  %v301_v3 = vmul.f32 %v1202_v0, %v230_v50 }
  0x41   : > { %v432_v63 = vmax.f32 %v368_v53, 0.0  ;;  %v433_v6 = vmax.f32 %v369_v58, 0.0  ;;  %v371_v7 = vadd.f32 %v1212_v1, %v300_v59  ;;  %v302_v8 = vmul.f32 %v1202_v0, %v231_v55 }
  0x42   : > { %v1089_v5 = vpack.c.bf16 %v431_v57, %v430_v56  ;;  %1144 = vst [vmem:[%s1244_s26 + $0xc0] sm:$0xff] %v1084_v62   ;;  %v434_v10 = vmax.f32 %v370_v2, 0.0  ;;  %v372_v11 = vadd.f32 %v1212_v1, %v301_v3  ;;  %v303_v12 = vmul.f32 %v1202_v0, %v232_v60 }
  0x43   : > { %v304_v13 = vmul.f32 %v1202_v0, %v233_v61  ;;  %v1094_v15 = vpack.c.bf16 %v433_v6, %v432_v63  ;;  %v435_v16 = vmax.f32 %v371_v7, 0.0  ;;  %v373_v17 = vadd.f32 %v1212_v1, %v302_v8 }
  0x44   : > { %1145 = vst [vmem:[%s1244_s26 + $0xc8] sm:$0xff] %v1089_v5   ;;  %v305_v18 = vmul.f32 %v1202_v0, %v234_v4  ;;  %v436_v20 = vmax.f32 %v372_v11, 0.0  ;;  %v374_v21 = vadd.f32 %v1212_v1, %v303_v12  ;;  %v306_v23 = vmul.f32 %v1202_v0, %v235_v9 }
  0x45   : > { %v375_v22 = vadd.f32 %v1212_v1, %v304_v13  ;;  %1146 = vst [vmem:[%s1244_s26 + $0xd0] sm:$0xff] %v1094_v15   ;;  %v1099_v24 = vpack.c.bf16 %v435_v16, %v434_v10  ;;  %v437_v25 = vmax.f32 %v373_v17, 0.0  ;;  %v307_v27 = vmul.f32 %v1202_v0, %v236_v14 }
  0x46   : > { %v376_v26 = vadd.f32 %v1212_v1, %v305_v18  ;;  %v438_v28 = vmax.f32 %v374_v21, 0.0  ;;  %v377_v30 = vadd.f32 %v1212_v1, %v306_v23  ;;  %v308_v31 = vmul.f32 %v1202_v0, %v237_v19 }
  0x47   : > { %v439_v29 = vmax.f32 %v375_v22, 0.0  ;;  %1147 = vst [vmem:[%s1244_s26 + $0xd8] sm:$0xff] %v1099_v24   ;;  %v1104_v32 = vpack.c.bf16 %v437_v25, %v436_v20  ;;  %v378_v34 = vadd.f32 %v1212_v1, %v307_v27 }
  0x48   : > { %v440_v33 = vmax.f32 %v376_v26, 0.0  ;;  %v441_v36 = vmax.f32 %v377_v30, 0.0  ;;  %v379_v37 = vadd.f32 %v1212_v1, %v308_v31 }
  0x49   : > { %v1109_v35 = vpack.c.bf16 %v439_v29, %v438_v28  ;;  %1148 = vst [vmem:[%s1244_s26 + $0xe0] sm:$0xff] %v1104_v32   ;;  %v442_v38 = vmax.f32 %v378_v34, 0.0 }
  0x4a   : > { %v1114_v39 = vpack.c.bf16 %v441_v36, %v440_v33  ;;  %v443_v40 = vmax.f32 %v379_v37, 0.0 }
  0x4b   : > { %1149 = vst [vmem:[%s1244_s26 + $0xe8] sm:$0xff] %v1109_v35  }
  0x4c   : > { %1150 = vst [vmem:[%s1244_s26 + $0xf0] sm:$0xff] %v1114_v39   ;;  %v1119_v41 = vpack.c.bf16 %v443_v40, %v442_v38 }
  0x4e   : > { %1151 = vst [vmem:[%s1244_s26 + $0xf8] sm:$0xff] %v1119_v41  }
  0x4f PF: > { %s13_s12 = sadd.s32 1, %s1166_s12  }
  0x50   : > { %p10_p4 = scmp.ge.s32.totalorder %s13_s12, 4  }
  0x52   :  { %12 = sbr.rel (!%p10_p4) target bundleno = 1 (0x1), region = 62 }

// kernel: pub_forward.7
= control target key start
LH: loop header
LB: loop body
LE: loop exit
PB: predicated region body
PF: predicated region fallthrough
CT: control target
= control target key end

     0   :  { %s613_s12 = smov 0   ;;  %s900_s0 = inlined_call_operand.vmem [shape: f32[1024,128], index: 0, kind: input, shape index: {}]   ;;  %s901_s1 = inlined_call_operand.vmem [shape: f32[1,128], index: 1, kind: input, shape index: {}]   ;;  %s902_s2 = inlined_call_operand.vmem [shape: f32[1,128], index: 2, kind: input, shape index: {}]   ;;  %s903_s3 = inlined_call_operand.vmem [shape: f32[1024,128], index: 3, kind: output, shape index: {}]  }
   0x1 LB: > { %s564_s13 = sadd.s32 4294967295, %s591_s12   ;;  %p568_p0 = scmp.ge.s32.totalorder %s591_s12, 1  ;;  %s591_s12 = sphi %s613_s12, %s13_s12  }
   0x2   : > { %p138_p1 = scmp.lt.s32.totalorder %s591_s12, 3 }
   0x4   : > { %p139_p2 = pnand %p568_p0, %p138_p1 }
   0x5   : > { %s569_s14 = sshll.u32 (!%p139_p2), %s564_s13, 6  ;;  %v624_v0 = vld [vmem:[%s901_s1] ss:$0 sm:$0xff] (!%p139_p2) }
   0x6   : > { %142 = sbr.rel (%p139_p2) target bundleno = 70 (0x46), region = 32  ;;  %p163_p3 = scmp.lt.s32.totalorder (!%p139_p2), %s569_s14, 127  ;;  %v634_v1 = vld [vmem:[%s902_s2] ss:$0 sm:$0xff] (!%p139_p2) }
   0xd   : > { %s905_s14 = smov (!%p163_p3, %s569_s14), 127 }
   0xe   : > { %s570_s15 = sshll.u32 %s905_s14, 3 }
   0xf   : > { %s629_s20 = scalar_lea.vmem %s900_s0, %s570_s15  ;;  %s657_s25 = scalar_lea.vmem %s903_s3, %s570_s15 }
  0x10   : > { %v174_v2 = vld [vmem:[%s629_s20] sm:$0xff]  ;;  %v175_v3 = vld [vmem:[%s629_s20 + $0x8] sm:$0xff]  ;;  %v176_v4 = vld [vmem:[%s629_s20 + $0x10] sm:$0xff] }
  0x11   : > { %v245_v5 = vmul.f32 %v624_v0, %v174_v2  ;;  %v246_v6 = vmul.f32 %v624_v0, %v175_v3  ;;  %v247_v7 = vmul.f32 %v624_v0, %v176_v4  ;;  %v177_v8 = vld [vmem:[%s629_s20 + $0x18] sm:$0xff]  ;;  %v178_v9 = vld [vmem:[%s629_s20 + $0x20] sm:$0xff]  ;;  %v179_v10 = vld [vmem:[%s629_s20 + $0x28] sm:$0xff] }
  0x12   : > { %v248_v11 = vmul.f32 %v624_v0, %v177_v8  ;;  %v249_v12 = vmul.f32 %v624_v0, %v178_v9  ;;  %v250_v13 = vmul.f32 %v624_v0, %v179_v10  ;;  %v180_v14 = vld [vmem:[%s629_s20 + $0x30] sm:$0xff]  ;;  %v181_v15 = vld [vmem:[%s629_s20 + $0x38] sm:$0xff]  ;;  %v182_v24 = vld [vmem:[%s629_s20 + $0x40] sm:$0xff] }
  0x13   : > { %v316_v16 = vadd.f32 %v634_v1, %v245_v5  ;;  %v317_v17 = vadd.f32 %v634_v1, %v246_v6  ;;  %v318_v18 = vadd.f32 %v634_v1, %v247_v7  ;;  %v251_v19 = vmul.f32 %v624_v0, %v180_v14  ;;  %v183_v25 = vld [vmem:[%s629_s20 + $0x48] sm:$0xff]  ;;  %v184_v26 = vld [vmem:[%s629_s20 + $0x50] sm:$0xff]  ;;  %v185_v31 = vld [vmem:[%s629_s20 + $0x58] sm:$0xff] }
  0x14   : > { %v319_v20 = vadd.f32 %v634_v1, %v248_v11  ;;  %v320_v21 = vadd.f32 %v634_v1, %v249_v12  ;;  %v321_v22 = vadd.f32 %v634_v1, %v250_v13  ;;  %v252_v23 = vmul.f32 %v624_v0, %v181_v15  ;;  %v186_v32 = vld [vmem:[%s629_s20 + $0x60] sm:$0xff]  ;;  %v187_v33 = vld [vmem:[%s629_s20 + $0x68] sm:$0xff]  ;;  %v188_v38 = vld [vmem:[%s629_s20 + $0x70] sm:$0xff] }
  0x15   : > { %v380_v27 = vmax.f32 %v316_v16, 0.0  ;;  %v381_v28 = vmax.f32 %v317_v17, 0.0  ;;  %v382_v29 = vmax.f32 %v318_v18, 0.0  ;;  %v322_v30 = vadd.f32 %v634_v1, %v251_v19  ;;  %v189_v43 = vld [vmem:[%s629_s20 + $0x78] sm:$0xff]  ;;  %v190_v56 = vld [vmem:[%s629_s20 + $0x80] sm:$0xff]  ;;  %v191_v57 = vld [vmem:[%s629_s20 + $0x88] sm:$0xff] }
  0x16   : > { %v383_v34 = vmax.f32 %v319_v20, 0.0  ;;  %v384_v35 = vmax.f32 %v320_v21, 0.0  ;;  %v385_v36 = vmax.f32 %v321_v22, 0.0  ;;  %v323_v37 = vadd.f32 %v634_v1, %v252_v23  ;;  %v192_v58 = vld [vmem:[%s629_s20 + $0x90] sm:$0xff]  ;;  %v193_v63 = vld [vmem:[%s629_s20 + $0x98] sm:$0xff]  ;;  %v194_v2 = vld [vmem:[%s629_s20 + $0xa0] sm:$0xff] }
  0x17   : > { %444 = vst [vmem:[%s657_s25] sm:$0xff] %v380_v27  ;;  %445 = vst [vmem:[%s657_s25 + $0x8] sm:$0xff] %v381_v28  ;;  %v386_v39 = vmax.f32 %v322_v30, 0.0  ;;  %v253_v40 = vmul.f32 %v624_v0, %v182_v24  ;;  %v254_v41 = vmul.f32 %v624_v0, %v183_v25  ;;  %v255_v42 = vmul.f32 %v624_v0, %v184_v26  ;;  %v195_v3 = vld [vmem:[%s629_s20 + $0xa8] sm:$0xff]  ;;  %v196_v8 = vld [vmem:[%s629_s20 + $0xb0] sm:$0xff] }
  0x18   : > { %446 = vst [vmem:[%s657_s25 + $0x10] sm:$0xff] %v382_v29  ;;  %447 = vst [vmem:[%s657_s25 + $0x18] sm:$0xff] %v383_v34  ;;  %v387_v44 = vmax.f32 %v323_v37, 0.0  ;;  %v256_v45 = vmul.f32 %v624_v0, %v185_v31  ;;  %v257_v46 = vmul.f32 %v624_v0, %v186_v32  ;;  %v258_v47 = vmul.f32 %v624_v0, %v187_v33  ;;  %v197_v13 = vld [vmem:[%s629_s20 + $0xb8] sm:$0xff]  ;;  %v198_v26 = vld [vmem:[%s629_s20 + $0xc0] sm:$0xff] }
  0x19   : > { %448 = vst [vmem:[%s657_s25 + $0x20] sm:$0xff] %v384_v35  ;;  %449 = vst [vmem:[%s657_s25 + $0x28] sm:$0xff] %v385_v36  ;;  %v324_v48 = vadd.f32 %v634_v1, %v253_v40  ;;  %v325_v49 = vadd.f32 %v634_v1, %v254_v41  ;;  %v326_v50 = vadd.f32 %v634_v1, %v255_v42  ;;  %v199_v27 = vld [vmem:[%s629_s20 + $0xc8] sm:$0xff]  ;;  %v200_v28 = vld [vmem:[%s629_s20 + $0xd0] sm:$0xff] }
  0x1a   : > { %450 = vst [vmem:[%s657_s25 + $0x30] sm:$0xff] %v386_v39  ;;  %v259_v51 = vmul.f32 %v624_v0, %v188_v38  ;;  %451 = vst [vmem:[%s657_s25 + $0x38] sm:$0xff] %v387_v44  ;;  %v327_v52 = vadd.f32 %v634_v1, %v256_v45  ;;  %v328_v53 = vadd.f32 %v634_v1, %v257_v46  ;;  %v201_v33 = vld [vmem:[%s629_s20 + $0xd8] sm:$0xff]  ;;  %v202_v34 = vld [vmem:[%s629_s20 + $0xe0] sm:$0xff] }
  0x1b   : > { %v329_v54 = vadd.f32 %v634_v1, %v258_v47  ;;  %v260_v55 = vmul.f32 %v624_v0, %v189_v43  ;;  %v388_v59 = vmax.f32 %v324_v48, 0.0  ;;  %v389_v60 = vmax.f32 %v325_v49, 0.0  ;;  %v203_v35 = vld [vmem:[%s629_s20 + $0xe8] sm:$0xff]  ;;  %v204_v40 = vld [vmem:[%s629_s20 + $0xf0] sm:$0xff]  ;;  %v205_v45 = vld [vmem:[%s629_s20 + $0xf8] sm:$0xff] }
  0x1c   : > { %v390_v61 = vmax.f32 %v326_v50, 0.0  ;;  %v330_v62 = vadd.f32 %v634_v1, %v259_v51  ;;  %v391_v4 = vmax.f32 %v327_v52, 0.0  ;;  %v392_v5 = vmax.f32 %v328_v53, 0.0 }
  0x1d   : > { %v393_v6 = vmax.f32 %v329_v54, 0.0  ;;  %v331_v7 = vadd.f32 %v634_v1, %v260_v55  ;;  %452 = vst [vmem:[%s657_s25 + $0x40] sm:$0xff] %v388_v59  ;;  %453 = vst [vmem:[%s657_s25 + $0x48] sm:$0xff] %v389_v60  ;;  %v261_v10 = vmul.f32 %v624_v0, %v190_v56  ;;  %v262_v11 = vmul.f32 %v624_v0, %v191_v57  ;;  %v207_v59 = vld [vmem:[%s629_s20 + $0x108] sm:$0xff]  ;;  %v208_v60 = vld [vmem:[%s629_s20 + $0x110] sm:$0xff] }
  0x1e   : > { %454 = vst [vmem:[%s657_s25 + $0x50] sm:$0xff] %v390_v61  ;;  %v394_v9 = vmax.f32 %v330_v62, 0.0  ;;  %v263_v12 = vmul.f32 %v624_v0, %v192_v58  ;;  %455 = vst [vmem:[%s657_s25 + $0x58] sm:$0xff] %v391_v4  ;;  %v264_v15 = vmul.f32 %v624_v0, %v193_v63  ;;  %v265_v16 = vmul.f32 %v624_v0, %v194_v2  ;;  %v206_v58 = vld [vmem:[%s629_s20 + $0x100] sm:$0xff] }
  0x1f   : > { %456 = vst [vmem:[%s657_s25 + $0x60] sm:$0xff] %v392_v5  ;;  %457 = vst [vmem:[%s657_s25 + $0x68] sm:$0xff] %v393_v6  ;;  %v395_v14 = vmax.f32 %v331_v7, 0.0  ;;  %v266_v17 = vmul.f32 %v624_v0, %v195_v3  ;;  %v332_v18 = vadd.f32 %v634_v1, %v261_v10  ;;  %v333_v19 = vadd.f32 %v634_v1, %v262_v11  ;;  %v209_v3 = vld [vmem:[%s629_s20 + $0x118] sm:$0xff]  ;;  %v210_v4 = vld [vmem:[%s629_s20 + $0x120] sm:$0xff] }
  0x20   : > { %458 = vst [vmem:[%s657_s25 + $0x70] sm:$0xff] %v394_v9  ;;  %v334_v20 = vadd.f32 %v634_v1, %v263_v12  ;;  %v267_v21 = vmul.f32 %v624_v0, %v196_v8  ;;  %v335_v22 = vadd.f32 %v634_v1, %v264_v15  ;;  %v336_v23 = vadd.f32 %v634_v1, %v265_v16  ;;  %v211_v5 = vld [vmem:[%s629_s20 + $0x128] sm:$0xff]  ;;  %v212_v10 = vld [vmem:[%s629_s20 + $0x130] sm:$0xff]  ;;  %v213_v15 = vld [vmem:[%s629_s20 + $0x138] sm:$0xff] }
  0x21   : > { %459 = vst [vmem:[%s657_s25 + $0x78] sm:$0xff] %v395_v14  ;;  %v337_v24 = vadd.f32 %v634_v1, %v266_v17  ;;  %v268_v25 = vmul.f32 %v624_v0, %v197_v13  ;;  %v396_v29 = vmax.f32 %v332_v18, 0.0  ;;  %v397_v30 = vmax.f32 %v333_v19, 0.0 }
  0x22   : > { %v398_v31 = vmax.f32 %v334_v20, 0.0  ;;  %v338_v32 = vadd.f32 %v634_v1, %v267_v21  ;;  %v399_v36 = vmax.f32 %v335_v22, 0.0  ;;  %v400_v37 = vmax.f32 %v336_v23, 0.0 }
  0x23   : > { %v401_v38 = vmax.f32 %v337_v24, 0.0  ;;  %v339_v39 = vadd.f32 %v634_v1, %v268_v25  ;;  %460 = vst [vmem:[%s657_s25 + $0x80] sm:$0xff] %v396_v29  ;;  %461 = vst [vmem:[%s657_s25 + $0x88] sm:$0xff] %v397_v30  ;;  %v269_v42 = vmul.f32 %v624_v0, %v198_v26  ;;  %v270_v43 = vmul.f32 %v624_v0, %v199_v27  ;;  %v215_v29 = vld [vmem:[%s629_s20 + $0x148] sm:$0xff]  ;;  %v216_v30 = vld [vmem:[%s629_s20 + $0x150] sm:$0xff] }
  0x24   : > { %462 = vst [vmem:[%s657_s25 + $0x90] sm:$0xff] %v398_v31  ;;  %v402_v41 = vmax.f32 %v338_v32, 0.0  ;;  %v271_v44 = vmul.f32 %v624_v0, %v200_v28  ;;  %463 = vst [vmem:[%s657_s25 + $0x98] sm:$0xff] %v399_v36  ;;  %v272_v47 = vmul.f32 %v624_v0, %v201_v33  ;;  %v273_v48 = vmul.f32 %v624_v0, %v202_v34  ;;  %v214_v28 = vld [vmem:[%s629_s20 + $0x140] sm:$0xff] }
  0x25   : > { %464 = vst [vmem:[%s657_s25 + $0xa0] sm:$0xff] %v400_v37  ;;  %465 = vst [vmem:[%s657_s25 + $0xa8] sm:$0xff] %v401_v38  ;;  %v403_v46 = vmax.f32 %v339_v39, 0.0  ;;  %v274_v49 = vmul.f32 %v624_v0, %v203_v35  ;;  %v340_v50 = vadd.f32 %v634_v1, %v269_v42  ;;  %v341_v51 = vadd.f32 %v634_v1, %v270_v43  ;;  %v217_v35 = vld [vmem:[%s629_s20 + $0x158] sm:$0xff]  ;;  %v218_v36 = vld [vmem:[%s629_s20 + $0x160] sm:$0xff] }
  0x26   : > { %466 = vst [vmem:[%s657_s25 + $0xb0] sm:$0xff] %v402_v41  ;;  %v342_v52 = vadd.f32 %v634_v1, %v271_v44  ;;  %v275_v53 = vmul.f32 %v624_v0, %v204_v40  ;;  %v343_v54 = vadd.f32 %v634_v1, %v272_v47  ;;  %v344_v55 = vadd.f32 %v634_v1, %v273_v48  ;;  %v219_v37 = vld [vmem:[%s629_s20 + $0x168] sm:$0xff]  ;;  %v220_v42 = vld [vmem:[%s629_s20 + $0x170] sm:$0xff]  ;;  %v221_v47 = vld [vmem:[%s629_s20 + $0x178] sm:$0xff] }
  0x27   : > { %467 = vst [vmem:[%s657_s25 + $0xb8] sm:$0xff] %v403_v46  ;;  %v345_v56 = vadd.f32 %v634_v1, %v274_v49  ;;  %v276_v57 = vmul.f32 %v624_v0, %v205_v45  ;;  %v404_v61 = vmax.f32 %v340_v50, 0.0  ;;  %v405_v62 = vmax.f32 %v341_v51, 0.0 }
  0x28   : > { %v406_v63 = vmax.f32 %v342_v52, 0.0  ;;  %v346_v2 = vadd.f32 %v634_v1, %v275_v53  ;;  %v407_v6 = vmax.f32 %v343_v54, 0.0  ;;  %v408_v7 = vmax.f32 %v344_v55, 0.0 }
  0x29   : > { %v409_v8 = vmax.f32 %v345_v56, 0.0  ;;  %v347_v9 = vadd.f32 %v634_v1, %v276_v57  ;;  %468 = vst [vmem:[%s657_s25 + $0xc0] sm:$0xff] %v404_v61  ;;  %469 = vst [vmem:[%s657_s25 + $0xc8] sm:$0xff] %v405_v62  ;;  %v277_v12 = vmul.f32 %v624_v0, %v206_v58  ;;  %v278_v13 = vmul.f32 %v624_v0, %v207_v59  ;;  %v223_v61 = vld [vmem:[%s629_s20 + $0x188] sm:$0xff]  ;;  %v224_v62 = vld [vmem:[%s629_s20 + $0x190] sm:$0xff] }
  0x2a   : > { %470 = vst [vmem:[%s657_s25 + $0xd0] sm:$0xff] %v406_v63  ;;  %v410_v11 = vmax.f32 %v346_v2, 0.0  ;;  %v279_v14 = vmul.f32 %v624_v0, %v208_v60  ;;  %471 = vst [vmem:[%s657_s25 + $0xd8] sm:$0xff] %v407_v6  ;;  %v280_v17 = vmul.f32 %v624_v0, %v209_v3  ;;  %v281_v18 = vmul.f32 %v624_v0, %v210_v4  ;;  %v222_v60 = vld [vmem:[%s629_s20 + $0x180] sm:$0xff] }
  0x2b   : > { %472 = vst [vmem:[%s657_s25 + $0xe0] sm:$0xff] %v408_v7  ;;  %473 = vst [vmem:[%s657_s25 + $0xe8] sm:$0xff] %v409_v8  ;;  %v411_v16 = vmax.f32 %v347_v9, 0.0  ;;  %v282_v19 = vmul.f32 %v624_v0, %v211_v5  ;;  %v348_v20 = vadd.f32 %v634_v1, %v277_v12  ;;  %v349_v21 = vadd.f32 %v634_v1, %v278_v13  ;;  %v225_v5 = vld [vmem:[%s629_s20 + $0x198] sm:$0xff]  ;;  %v226_v6 = vld [vmem:[%s629_s20 + $0x1a0] sm:$0xff] }
  0x2c   : > { %474 = vst [vmem:[%s657_s25 + $0xf0] sm:$0xff] %v410_v11  ;;  %v350_v22 = vadd.f32 %v634_v1, %v279_v14  ;;  %v283_v23 = vmul.f32 %v624_v0, %v212_v10  ;;  %v351_v24 = vadd.f32 %v634_v1, %v280_v17  ;;  %v352_v25 = vadd.f32 %v634_v1, %v281_v18  ;;  %v227_v7 = vld [vmem:[%s629_s20 + $0x1a8] sm:$0xff]  ;;  %v228_v12 = vld [vmem:[%s629_s20 + $0x1b0] sm:$0xff]  ;;  %v229_v17 = vld [vmem:[%s629_s20 + $0x1b8] sm:$0xff] }
  0x2d   : > { %475 = vst [vmem:[%s657_s25 + $0xf8] sm:$0xff] %v411_v16  ;;  %v353_v26 = vadd.f32 %v634_v1, %v282_v19  ;;  %v284_v27 = vmul.f32 %v624_v0, %v213_v15  ;;  %v412_v31 = vmax.f32 %v348_v20, 0.0  ;;  %v413_v32 = vmax.f32 %v349_v21, 0.0 }
  0x2e   : > { %v414_v33 = vmax.f32 %v350_v22, 0.0  ;;  %v354_v34 = vadd.f32 %v634_v1, %v283_v23  ;;  %v415_v38 = vmax.f32 %v351_v24, 0.0  ;;  %v416_v39 = vmax.f32 %v352_v25, 0.0 }
  0x2f   : > { %v417_v40 = vmax.f32 %v353_v26, 0.0  ;;  %v355_v41 = vadd.f32 %v634_v1, %v284_v27  ;;  %476 = vst [vmem:[%s657_s25 + $0x100] sm:$0xff] %v412_v31  ;;  %477 = vst [vmem:[%s657_s25 + $0x108] sm:$0xff] %v413_v32  ;;  %v285_v44 = vmul.f32 %v624_v0, %v214_v28  ;;  %v286_v45 = vmul.f32 %v624_v0, %v215_v29  ;;  %v231_v31 = vld [vmem:[%s629_s20 + $0x1c8] sm:$0xff]  ;;  %v232_v32 = vld [vmem:[%s629_s20 + $0x1d0] sm:$0xff] }
  0x30   : > { %478 = vst [vmem:[%s657_s25 + $0x110] sm:$0xff] %v414_v33  ;;  %v418_v43 = vmax.f32 %v354_v34, 0.0  ;;  %v287_v46 = vmul.f32 %v624_v0, %v216_v30  ;;  %479 = vst [vmem:[%s657_s25 + $0x118] sm:$0xff] %v415_v38  ;;  %v288_v49 = vmul.f32 %v624_v0, %v217_v35  ;;  %v289_v50 = vmul.f32 %v624_v0, %v218_v36  ;;  %v230_v30 = vld [vmem:[%s629_s20 + $0x1c0] sm:$0xff] }
  0x31   : > { %480 = vst [vmem:[%s657_s25 + $0x120] sm:$0xff] %v416_v39  ;;  %481 = vst [vmem:[%s657_s25 + $0x128] sm:$0xff] %v417_v40  ;;  %v419_v48 = vmax.f32 %v355_v41, 0.0  ;;  %v290_v51 = vmul.f32 %v624_v0, %v219_v37  ;;  %v356_v52 = vadd.f32 %v634_v1, %v285_v44  ;;  %v357_v53 = vadd.f32 %v634_v1, %v286_v45  ;;  %v233_v37 = vld [vmem:[%s629_s20 + $0x1d8] sm:$0xff]  ;;  %v234_v38 = vld [vmem:[%s629_s20 + $0x1e0] sm:$0xff] }
  0x32   : > { %482 = vst [vmem:[%s657_s25 + $0x130] sm:$0xff] %v418_v43  ;;  %v358_v54 = vadd.f32 %v634_v1, %v287_v46  ;;  %v291_v55 = vmul.f32 %v624_v0, %v220_v42  ;;  %v359_v56 = vadd.f32 %v634_v1, %v288_v49  ;;  %v360_v57 = vadd.f32 %v634_v1, %v289_v50  ;;  %v235_v39 = vld [vmem:[%s629_s20 + $0x1e8] sm:$0xff]  ;;  %v236_v44 = vld [vmem:[%s629_s20 + $0x1f0] sm:$0xff]  ;;  %v237_v49 = vld [vmem:[%s629_s20 + $0x1f8] sm:$0xff] }
  0x33   : > { %483 = vst [vmem:[%s657_s25 + $0x138] sm:$0xff] %v419_v48  ;;  %v361_v58 = vadd.f32 %v634_v1, %v290_v51  ;;  %v292_v59 = vmul.f32 %v624_v0, %v221_v47  ;;  %v420_v63 = vmax.f32 %v356_v52, 0.0  ;;  %v421_v2 = vmax.f32 %v357_v53, 0.0 }
  0x34   : > { %v422_v3 = vmax.f32 %v358_v54, 0.0  ;;  %v362_v4 = vadd.f32 %v634_v1, %v291_v55  ;;  %v423_v8 = vmax.f32 %v359_v56, 0.0  ;;  %v424_v9 = vmax.f32 %v360_v57, 0.0 }
  0x35   : > { %v425_v10 = vmax.f32 %v361_v58, 0.0  ;;  %v363_v11 = vadd.f32 %v634_v1, %v292_v59  ;;  %484 = vst [vmem:[%s657_s25 + $0x140] sm:$0xff] %v420_v63  ;;  %485 = vst [vmem:[%s657_s25 + $0x148] sm:$0xff] %v421_v2  ;;  %v293_v14 = vmul.f32 %v624_v0, %v222_v60  ;;  %v294_v15 = vmul.f32 %v624_v0, %v223_v61 }
  0x36   : > { %486 = vst [vmem:[%s657_s25 + $0x150] sm:$0xff] %v422_v3  ;;  %v426_v13 = vmax.f32 %v362_v4, 0.0  ;;  %v295_v16 = vmul.f32 %v624_v0, %v224_v62  ;;  %487 = vst [vmem:[%s657_s25 + $0x158] sm:$0xff] %v423_v8  ;;  %v296_v19 = vmul.f32 %v624_v0, %v225_v5  ;;  %v297_v20 = vmul.f32 %v624_v0, %v226_v6 }
  0x37   : > { %488 = vst [vmem:[%s657_s25 + $0x160] sm:$0xff] %v424_v9  ;;  %489 = vst [vmem:[%s657_s25 + $0x168] sm:$0xff] %v425_v10  ;;  %v427_v18 = vmax.f32 %v363_v11, 0.0  ;;  %v298_v21 = vmul.f32 %v624_v0, %v227_v7  ;;  %v364_v22 = vadd.f32 %v634_v1, %v293_v14  ;;  %v365_v23 = vadd.f32 %v634_v1, %v294_v15 }
  0x38   : > { %490 = vst [vmem:[%s657_s25 + $0x170] sm:$0xff] %v426_v13  ;;  %v366_v24 = vadd.f32 %v634_v1, %v295_v16  ;;  %v299_v25 = vmul.f32 %v624_v0, %v228_v12  ;;  %v367_v26 = vadd.f32 %v634_v1, %v296_v19  ;;  %v368_v27 = vadd.f32 %v634_v1, %v297_v20 }
  0x39   : > { %491 = vst [vmem:[%s657_s25 + $0x178] sm:$0xff] %v427_v18  ;;  %v369_v28 = vadd.f32 %v634_v1, %v298_v21  ;;  %v300_v29 = vmul.f32 %v624_v0, %v229_v17  ;;  %v428_v33 = vmax.f32 %v364_v22, 0.0  ;;  %v429_v34 = vmax.f32 %v365_v23, 0.0 }
  0x3a   : > { %v430_v35 = vmax.f32 %v366_v24, 0.0  ;;  %v370_v36 = vadd.f32 %v634_v1, %v299_v25  ;;  %v431_v40 = vmax.f32 %v367_v26, 0.0  ;;  %v432_v41 = vmax.f32 %v368_v27, 0.0 }
  0x3b   : > { %v433_v42 = vmax.f32 %v369_v28, 0.0  ;;  %v371_v43 = vadd.f32 %v634_v1, %v300_v29  ;;  %492 = vst [vmem:[%s657_s25 + $0x180] sm:$0xff] %v428_v33  ;;  %493 = vst [vmem:[%s657_s25 + $0x188] sm:$0xff] %v429_v34  ;;  %v301_v46 = vmul.f32 %v624_v0, %v230_v30  ;;  %v302_v47 = vmul.f32 %v624_v0, %v231_v31 }
  0x3c   : > { %494 = vst [vmem:[%s657_s25 + $0x190] sm:$0xff] %v430_v35  ;;  %v434_v45 = vmax.f32 %v370_v36, 0.0  ;;  %v303_v48 = vmul.f32 %v624_v0, %v232_v32  ;;  %495 = vst [vmem:[%s657_s25 + $0x198] sm:$0xff] %v431_v40  ;;  %v304_v51 = vmul.f32 %v624_v0, %v233_v37  ;;  %v305_v52 = vmul.f32 %v624_v0, %v234_v38 }
  0x3d   : > { %496 = vst [vmem:[%s657_s25 + $0x1a0] sm:$0xff] %v432_v41  ;;  %497 = vst [vmem:[%s657_s25 + $0x1a8] sm:$0xff] %v433_v42  ;;  %v435_v50 = vmax.f32 %v371_v43, 0.0  ;;  %v306_v53 = vmul.f32 %v624_v0, %v235_v39  ;;  %v372_v54 = vadd.f32 %v634_v1, %v301_v46  ;;  %v373_v55 = vadd.f32 %v634_v1, %v302_v47 }
  0x3e   : > { %498 = vst [vmem:[%s657_s25 + $0x1b0] sm:$0xff] %v434_v45  ;;  %v374_v56 = vadd.f32 %v634_v1, %v303_v48  ;;  %v307_v57 = vmul.f32 %v624_v0, %v236_v44  ;;  %v375_v58 = vadd.f32 %v634_v1, %v304_v51  ;;  %v376_v59 = vadd.f32 %v634_v1, %v305_v52 }
  0x3f   : > { %499 = vst [vmem:[%s657_s25 + $0x1b8] sm:$0xff] %v435_v50  ;;  %v377_v60 = vadd.f32 %v634_v1, %v306_v53  ;;  %v308_v61 = vmul.f32 %v624_v0, %v237_v49  ;;  %v436_v62 = vmax.f32 %v372_v54, 0.0  ;;  %v437_v63 = vmax.f32 %v373_v55, 0.0 }
  0x40   : > { %v438_v2 = vmax.f32 %v374_v56, 0.0  ;;  %v378_v3 = vadd.f32 %v634_v1, %v307_v57  ;;  %v439_v4 = vmax.f32 %v375_v58, 0.0  ;;  %v440_v5 = vmax.f32 %v376_v59, 0.0 }
  0x41   : > { %v441_v6 = vmax.f32 %v377_v60, 0.0  ;;  %v379_v7 = vadd.f32 %v634_v1, %v308_v61  ;;  %500 = vst [vmem:[%s657_s25 + $0x1c0] sm:$0xff] %v436_v62  ;;  %501 = vst [vmem:[%s657_s25 + $0x1c8] sm:$0xff] %v437_v63 }
  0x42   : > { %502 = vst [vmem:[%s657_s25 + $0x1d0] sm:$0xff] %v438_v2  ;;  %v442_v8 = vmax.f32 %v378_v3, 0.0  ;;  %503 = vst [vmem:[%s657_s25 + $0x1d8] sm:$0xff] %v439_v4 }
  0x43   : > { %504 = vst [vmem:[%s657_s25 + $0x1e0] sm:$0xff] %v440_v5  ;;  %505 = vst [vmem:[%s657_s25 + $0x1e8] sm:$0xff] %v441_v6  ;;  %v443_v0 = vmax.f32 %v379_v7, 0.0 }
  0x44   : > { %506 = vst [vmem:[%s657_s25 + $0x1f0] sm:$0xff] %v442_v8 }
  0x45   : > { %507 = vst [vmem:[%s657_s25 + $0x1f8] sm:$0xff] %v443_v0 }
  0x46 PF: > { %s13_s12 = sadd.s32 1, %s591_s12  }
  0x47   : > { %p10_p4 = scmp.ge.s32.totalorder %s13_s12, 4  }
  0x49   :  { %12 = sbr.rel (!%p10_p4) target bundleno = 1 (0x1), region = 62 }

</bundles_post_ra>
